<compile_context>
chip_gen: v6e
topology: v6e:2x2x1
jax: 0.10.0
libtpu: 0.0.40
codegen_flags: <defaults>
</compile_context>

<pallas_src>
import math

import jax
import jax.numpy as jnp
from jax import lax
from jax.experimental import pallas as pl
from jax.experimental.pallas import tpu as pltpu

EPS = 1e-6


def _encoder_layer_kernel(xq_ref, xkv_ref, wq_ref, wkv_ref, wo_ref, o_ref,
                          q_scr, m_scr, l_scr, acc_scr):
    # xq_ref/o_ref: (tq, D)   xkv_ref: (tk, D)
    # wq_ref: (D, D)   wkv_ref: (D, 2D)   wo_ref: (D, D)
    D = xq_ref.shape[-1]
    mm_dtype = xq_ref.dtype              # MXU operand dtype (bf16-friendly)
    ki = pl.program_id(2)
    scale = jnp.float32(1.0 / math.sqrt(D))

    # ---- per-q-tile init: project Q once, reset online-softmax state ----
    @pl.when(ki == 0)
    def _init():
        q = jnp.dot(xq_ref[...], wq_ref[...],
                    preferred_element_type=jnp.float32)
        q_scr[...] = (q * scale).astype(q_scr.dtype)     # fold 1/sqrt(D) into Q
        m_scr[...] = jnp.full_like(m_scr, -jnp.inf)
        l_scr[...] = jnp.zeros_like(l_scr)
        acc_scr[...] = jnp.zeros_like(acc_scr)

    # ---- fused K/V projection for this kv tile: one (tk, D) x (D, 2D) matmul ----
    kv = jnp.dot(xkv_ref[...], wkv_ref[...],
                 preferred_element_type=jnp.float32)      # (tk, 2D), f32 acc
    k = kv[:, :D].astype(mm_dtype)                        # lane-aligned slices
    v = kv[:, D:].astype(mm_dtype)

    # ---- scores: contract last dims of q and k (no materialized k.T) ----
    s = lax.dot_general(q_scr[...], k,
                        dimension_numbers=(((1,), (1,)), ((), ())),
                        preferred_element_type=jnp.float32)   # (tq, tk)

    # ---- online softmax update ----
    m_prev = m_scr[...]
    m_new = jnp.maximum(m_prev, jnp.max(s, axis=-1, keepdims=True))
    alpha = jnp.exp(m_prev - m_new)
    p = jnp.exp(s - m_new)
    l_scr[...] = alpha * l_scr[...] + jnp.sum(p, axis=-1, keepdims=True)
    acc_scr[...] = alpha * acc_scr[...] + jnp.dot(
        p.astype(mm_dtype), v, preferred_element_type=jnp.float32)
    m_scr[...] = m_new

    # ---- finalize: output projection, LayerNorm (torch std, ddof=1), residual ----
    @pl.when(ki == pl.num_programs(2) - 1)
    def _finalize():
        attn = acc_scr[...] * pl.reciprocal(l_scr[...], approx=True)   # (tq, D) f32
        y = jnp.dot(attn.astype(mm_dtype), wo_ref[...],
                    preferred_element_type=jnp.float32)                # (tq, D) f32
        mean = jnp.mean(y, axis=-1, keepdims=True)
        centered = y - mean
        var = jnp.sum(centered * centered, axis=-1, keepdims=True) * \
            jnp.float32(1.0 / (D - 1))
        std = jnp.sqrt(var)
        inv = pl.reciprocal(std + jnp.float32(EPS), approx=False)
        ln = centered * inv
        o_ref[...] = (xq_ref[...].astype(jnp.float32) + ln).astype(o_ref.dtype)


def encoder_layer(x, wqkv, wo, *, tq=None, tk=None):
    """x: (B, S, D); wqkv: (D, 3D) stacked [Wq | Wk | Wv]; wo: (D, D)."""
    B, S, D = x.shape
    assert wqkv.shape == (D, 3 * D) and wo.shape == (D, D)
    if tq is None:
        tq = min(128, S)
    if tk is None:
        tk = min(128, S)
    assert S % tq == 0 and S % tk == 0

    # Pre-split the fused weight so the kernel uses full-ref MXU operands.
    wq = wqkv[:, :D]
    wkv = wqkv[:, D:]

    grid = (B, S // tq, S // tk)

    return pl.pallas_call(
        _encoder_layer_kernel,
        out_shape=jax.ShapeDtypeStruct((B, S, D), x.dtype),
        grid_spec=pltpu.PrefetchScalarGridSpec(
            num_scalar_prefetch=0,
            grid=grid,
            in_specs=[
                # x as the q-tile (also the residual)
                pl.BlockSpec((None, tq, D), lambda b, qi, ki: (b, qi, 0)),
                # x as the kv-tile
                pl.BlockSpec((None, tk, D), lambda b, qi, ki: (b, ki, 0)),
                # grid-invariant projection weights (DMA'd once, reused)
                pl.BlockSpec((D, D), lambda b, qi, ki: (0, 0)),
                pl.BlockSpec((D, 2 * D), lambda b, qi, ki: (0, 0)),
                pl.BlockSpec((D, D), lambda b, qi, ki: (0, 0)),
            ],
            out_specs=pl.BlockSpec((None, tq, D), lambda b, qi, ki: (b, qi, 0)),
            scratch_shapes=[
                pltpu.VMEM((tq, D), x.dtype),       # scaled Q tile
                pltpu.VMEM((tq, 1), jnp.float32),   # running max m
                pltpu.VMEM((tq, 1), jnp.float32),   # running denom l
                pltpu.VMEM((tq, D), jnp.float32),   # output accumulator
            ],
        ),
        compiler_params=pltpu.CompilerParams(
            dimension_semantics=("parallel", "parallel", "arbitrary"),
            # Raise the scoped VMEM limit above the conservative v5e/v6e defaults
            # while staying under v7x's 64 MiB physical VMEM.
            vmem_limit_bytes=48 * 1024 * 1024,
        ),
    )(x, x, wq, wkv, wo)


def _reference(x, wqkv, wo):
    # Pure-JAX reference of the same math (for a sanity check).
    D = x.shape[-1]
    q = x @ wqkv[:, :D]
    k = x @ wqkv[:, D:2 * D]
    v = x @ wqkv[:, 2 * D:]
    scores = jnp.einsum("bqd,bkd->bqk", q, k) / math.sqrt(D)
    p = jax.nn.softmax(scores, axis=-1)
    attn = jnp.einsum("bqk,bkd->bqd", p, v) @ wo
    mean = attn.mean(-1, keepdims=True)
    std = jnp.sqrt(jnp.sum((attn - mean) ** 2, axis=-1, keepdims=True) / (D - 1))
    ln = (attn - mean) / (std + EPS)
    return x + ln


if __name__ == "__main__":
    key = jax.random.PRNGKey(0)
    # Small but lane-dense shapes: D multiple of 128; S chosen so tq=tk=64
    # exercises multiple q- and kv-tiles (the flash accumulation path).
    B, S, D = 2, 128, 128
    kx, kw, ko = jax.random.split(key, 3)

    w_scale = 1.0 / math.sqrt(D)
    x = jax.random.normal(kx, (B, S, D), dtype=jnp.float32)
    wqkv = jax.random.normal(kw, (D, 3 * D), dtype=jnp.float32) * w_scale
    wo = jax.random.normal(ko, (D, D), dtype=jnp.float32) * w_scale

    out = encoder_layer(x, wqkv, wo, tq=64, tk=64)
    out = jax.block_until_ready(out)

    ref = _reference(x, wqkv, wo)
    assert out.shape == (B, S, D)
    max_err = float(jnp.max(jnp.abs(out - ref)))
    assert jnp.allclose(out, ref, atol=1e-3, rtol=1e-3), \
        f"mismatch vs JAX reference (max abs err {max_err})"

    print("KERNEL_OK")
</pallas_src>

<mosaic_0001>
module attributes {stable_mosaic.version = 11 : i64} {
  func.func @_encoder_layer_kernel(%arg0: i32, %arg1: i32, %arg2: i32, %arg3: memref<1x64x128xf32, #tpu.memory_space<vmem>>, %arg4: memref<1x64x128xf32, #tpu.memory_space<vmem>>, %arg5: memref<128x128xf32, #tpu.memory_space<vmem>>, %arg6: memref<128x256xf32, #tpu.memory_space<vmem>>, %arg7: memref<128x128xf32, #tpu.memory_space<vmem>>, %arg8: memref<1x64x128xf32, #tpu.memory_space<vmem>>, %arg9: memref<64x128xf32, #tpu.memory_space<vmem>>, %arg10: memref<64x1xf32, #tpu.memory_space<vmem>>, %arg11: memref<64x1xf32, #tpu.memory_space<vmem>>, %arg12: memref<64x128xf32, #tpu.memory_space<vmem>>) attributes {dimension_semantics = [#tpu.dimension_semantics<parallel>, #tpu.dimension_semantics<parallel>, #tpu.dimension_semantics<arbitrary>], iteration_bounds = array<i64: 2, 2, 2>, scalar_prefetch = 0 : i64, scratch_operands = 4 : i64, tpu.core_type = #tpu.core_type<tc>, window_params = [{transform_indices = @transform_0, window_bounds = array<i64: 1, 64, 128>}, {transform_indices = @transform_1, window_bounds = array<i64: 1, 64, 128>}, {pipeline_mode = #tpu.pipeline_mode<synchronous>, transform_indices = @transform_2, window_bounds = array<i64: 128, 128>}, {pipeline_mode = #tpu.pipeline_mode<synchronous>, transform_indices = @transform_3, window_bounds = array<i64: 128, 256>}, {pipeline_mode = #tpu.pipeline_mode<synchronous>, transform_indices = @transform_4, window_bounds = array<i64: 128, 128>}, {transform_indices = @transform_5, window_bounds = array<i64: 1, 64, 128>}]} {
    %c0_i32 = arith.constant 0 : i32
    %0 = arith.cmpi eq, %arg2, %c0_i32 : i32
    %1 = arith.extui %0 : i1 to i32
    %cst = arith.constant 0.0883883461 : f32
    %c0_i32_0 = arith.constant 0 : i32
    %2 = arith.cmpi ne, %1, %c0_i32_0 : i32
    scf.if %2 {
      %c0_25 = arith.constant 0 : index
      %c0_26 = arith.constant 0 : index
      %c0_27 = arith.constant 0 : index
      %36 = vector.load %arg3[%c0_25, %c0_26, %c0_27] : memref<1x64x128xf32, #tpu.memory_space<vmem>>, vector<1x64x128xf32>
      %37 = vector.shape_cast %36 : vector<1x64x128xf32> to vector<64x128xf32>
      %c0_28 = arith.constant 0 : index
      %c0_29 = arith.constant 0 : index
      %38 = vector.load %arg5[%c0_28, %c0_29] : memref<128x128xf32, #tpu.memory_space<vmem>>, vector<128x128xf32>
      %cst_30 = arith.constant dense<0.000000e+00> : vector<64x128xf32>
      %39 = tpu.matmul %37, %38, %cst_30 {dimension_numbers = #tpu.dot_dimension_numbers<[1], [0], [0], [1], [0, 0, 1, 1], [], []>} : vector<64x128xf32>, vector<128x128xf32>, vector<64x128xf32> -> vector<64x128xf32>
      %40 = vector.broadcast %cst : f32 to vector<64x128xf32>
      %41 = arith.mulf %39, %40 : vector<64x128xf32>
      %c0_31 = arith.constant 0 : index
      %c0_32 = arith.constant 0 : index
      %42 = vector.load %arg9[%c0_31, %c0_32] : memref<64x128xf32, #tpu.memory_space<vmem>>, vector<64x128xf32>
      tpu.vector_store %arg9[%c0_31, %c0_32], %41 {strides = array<i32>} : memref<64x128xf32, #tpu.memory_space<vmem>>, vector<64x128xf32>,
      %cst_33 = arith.constant 0xFF800000 : f32
      %43 = vector.broadcast %cst_33 : f32 to vector<64x1xf32>
      %c0_34 = arith.constant 0 : index
      %c0_35 = arith.constant 0 : index
      %44 = vector.load %arg10[%c0_34, %c0_35] : memref<64x1xf32, #tpu.memory_space<vmem>>, vector<64x1xf32>
      tpu.vector_store %arg10[%c0_34, %c0_35], %43 {strides = array<i32>} : memref<64x1xf32, #tpu.memory_space<vmem>>, vector<64x1xf32>,
      %cst_36 = arith.constant 0.000000e+00 : f32
      %45 = vector.broadcast %cst_36 : f32 to vector<64x1xf32>
      %c0_37 = arith.constant 0 : index
      %c0_38 = arith.constant 0 : index
      %46 = vector.load %arg11[%c0_37, %c0_38] : memref<64x1xf32, #tpu.memory_space<vmem>>, vector<64x1xf32>
      tpu.vector_store %arg11[%c0_37, %c0_38], %45 {strides = array<i32>} : memref<64x1xf32, #tpu.memory_space<vmem>>, vector<64x1xf32>,
      %cst_39 = arith.constant 0.000000e+00 : f32
      %47 = vector.broadcast %cst_39 : f32 to vector<64x128xf32>
      %c0_40 = arith.constant 0 : index
      %c0_41 = arith.constant 0 : index
      %48 = vector.load %arg12[%c0_40, %c0_41] : memref<64x128xf32, #tpu.memory_space<vmem>>, vector<64x128xf32>
      tpu.vector_store %arg12[%c0_40, %c0_41], %47 {strides = array<i32>} : memref<64x128xf32, #tpu.memory_space<vmem>>, vector<64x128xf32>,
    } else {
    }
    %c0 = arith.constant 0 : index
    %c0_1 = arith.constant 0 : index
    %c0_2 = arith.constant 0 : index
    %3 = vector.load %arg4[%c0, %c0_1, %c0_2] : memref<1x64x128xf32, #tpu.memory_space<vmem>>, vector<1x64x128xf32>
    %4 = vector.shape_cast %3 : vector<1x64x128xf32> to vector<64x128xf32>
    %c0_3 = arith.constant 0 : index
    %c0_4 = arith.constant 0 : index
    %5 = vector.load %arg6[%c0_3, %c0_4] : memref<128x256xf32, #tpu.memory_space<vmem>>, vector<128x256xf32>
    %cst_5 = arith.constant dense<0.000000e+00> : vector<64x256xf32>
    %6 = tpu.matmul %4, %5, %cst_5 {dimension_numbers = #tpu.dot_dimension_numbers<[1], [0], [0], [1], [0, 0, 1, 1], [], []>} : vector<64x128xf32>, vector<128x256xf32>, vector<64x256xf32> -> vector<64x256xf32>
    %7 = vector.extract_strided_slice %6 {offsets = [0, 0], sizes = [64, 128], strides = [1, 1]} : vector<64x256xf32> to vector<64x128xf32>
    %8 = vector.extract_strided_slice %6 {offsets = [0, 128], sizes = [64, 128], strides = [1, 1]} : vector<64x256xf32> to vector<64x128xf32>
    %c0_6 = arith.constant 0 : index
    %c0_7 = arith.constant 0 : index
    %9 = vector.load %arg9[%c0_6, %c0_7] : memref<64x128xf32, #tpu.memory_space<vmem>>, vector<64x128xf32>
    %cst_8 = arith.constant dense<0.000000e+00> : vector<64x64xf32>
    %10 = tpu.matmul %9, %7, %cst_8 {dimension_numbers = #tpu.dot_dimension_numbers<[1], [1], [0], [0], [0, 0, 1, 0], [], []>} : vector<64x128xf32>, vector<64x128xf32>, vector<64x64xf32> -> vector<64x64xf32>
    %c0_9 = arith.constant 0 : index
    %c0_10 = arith.constant 0 : index
    %11 = vector.load %arg10[%c0_9, %c0_10] : memref<64x1xf32, #tpu.memory_space<vmem>>, vector<64x1xf32>
    %cst_11 = arith.constant dense<0xFF800000> : vector<64xf32>
    %12 = vector.multi_reduction <maximumf>, %10, %cst_11 [1] : vector<64x64xf32> to vector<64xf32>
    %13 = vector.shape_cast %12 : vector<64xf32> to vector<64x1xf32>
    %14 = arith.maximumf %11, %13 : vector<64x1xf32>
    %15 = arith.subf %11, %14 : vector<64x1xf32>
    %16 = math.exp %15 : vector<64x1xf32>
    %17 = vector.broadcast %14 : vector<64x1xf32> to vector<64x64xf32>
    %18 = arith.subf %10, %17 : vector<64x64xf32>
    %19 = math.exp %18 : vector<64x64xf32>
    %c0_12 = arith.constant 0 : index
    %c0_13 = arith.constant 0 : index
    %20 = vector.load %arg11[%c0_12, %c0_13] : memref<64x1xf32, #tpu.memory_space<vmem>>, vector<64x1xf32>
    %21 = arith.mulf %16, %20 : vector<64x1xf32>
    %cst_14 = arith.constant dense<0.000000e+00> : vector<64xf32>
    %22 = vector.multi_reduction <add>, %19, %cst_14 [1] : vector<64x64xf32> to vector<64xf32>
    %23 = vector.shape_cast %22 : vector<64xf32> to vector<64x1xf32>
    %24 = arith.addf %21, %23 : vector<64x1xf32>
    %c0_15 = arith.constant 0 : index
    %c0_16 = arith.constant 0 : index
    %25 = vector.load %arg11[%c0_15, %c0_16] : memref<64x1xf32, #tpu.memory_space<vmem>>, vector<64x1xf32>
    tpu.vector_store %arg11[%c0_15, %c0_16], %24 {strides = array<i32>} : memref<64x1xf32, #tpu.memory_space<vmem>>, vector<64x1xf32>,
    %c0_17 = arith.constant 0 : index
    %c0_18 = arith.constant 0 : index
    %26 = vector.load %arg12[%c0_17, %c0_18] : memref<64x128xf32, #tpu.memory_space<vmem>>, vector<64x128xf32>
    %27 = vector.broadcast %16 : vector<64x1xf32> to vector<64x128xf32>
    %28 = arith.mulf %27, %26 : vector<64x128xf32>
    %cst_19 = arith.constant dense<0.000000e+00> : vector<64x128xf32>
    %29 = tpu.matmul %19, %8, %cst_19 {dimension_numbers = #tpu.dot_dimension_numbers<[1], [0], [0], [1], [0, 0, 1, 1], [], []>} : vector<64x64xf32>, vector<64x128xf32>, vector<64x128xf32> -> vector<64x128xf32>
    %30 = arith.addf %28, %29 : vector<64x128xf32>
    %c0_20 = arith.constant 0 : index
    %c0_21 = arith.constant 0 : index
    %31 = vector.load %arg12[%c0_20, %c0_21] : memref<64x128xf32, #tpu.memory_space<vmem>>, vector<64x128xf32>
    tpu.vector_store %arg12[%c0_20, %c0_21], %30 {strides = array<i32>} : memref<64x128xf32, #tpu.memory_space<vmem>>, vector<64x128xf32>,
    %c0_22 = arith.constant 0 : index
    %c0_23 = arith.constant 0 : index
    %32 = vector.load %arg10[%c0_22, %c0_23] : memref<64x1xf32, #tpu.memory_space<vmem>>, vector<64x1xf32>
    tpu.vector_store %arg10[%c0_22, %c0_23], %14 {strides = array<i32>} : memref<64x1xf32, #tpu.memory_space<vmem>>, vector<64x1xf32>,
    %c1_i32 = arith.constant 1 : i32
    %33 = arith.cmpi eq, %arg2, %c1_i32 : i32
    %34 = arith.extui %33 : i1 to i32
    %c0_i32_24 = arith.constant 0 : i32
    %35 = arith.cmpi ne, %34, %c0_i32_24 : i32
    scf.if %35 {
      %c0_25 = arith.constant 0 : index
      %c0_26 = arith.constant 0 : index
      %36 = vector.load %arg12[%c0_25, %c0_26] : memref<64x128xf32, #tpu.memory_space<vmem>>, vector<64x128xf32>
      %c0_27 = arith.constant 0 : index
      %c0_28 = arith.constant 0 : index
      %37 = vector.load %arg11[%c0_27, %c0_28] : memref<64x1xf32, #tpu.memory_space<vmem>>, vector<64x1xf32>
      %38 = tpu.reciprocal %37 {approx = true} : vector<64x1xf32> -> vector<64x1xf32>
      %39 = vector.broadcast %38 : vector<64x1xf32> to vector<64x128xf32>
      %40 = arith.mulf %36, %39 : vector<64x128xf32>
      %c0_29 = arith.constant 0 : index
      %c0_30 = arith.constant 0 : index
      %41 = vector.load %arg7[%c0_29, %c0_30] : memref<128x128xf32, #tpu.memory_space<vmem>>, vector<128x128xf32>
      %cst_31 = arith.constant dense<0.000000e+00> : vector<64x128xf32>
      %42 = tpu.matmul %40, %41, %cst_31 {dimension_numbers = #tpu.dot_dimension_numbers<[1], [0], [0], [1], [0, 0, 1, 1], [], []>} : vector<64x128xf32>, vector<128x128xf32>, vector<64x128xf32> -> vector<64x128xf32>
      %cst_32 = arith.constant dense<0.000000e+00> : vector<64xf32>
      %43 = vector.multi_reduction <add>, %42, %cst_32 [1] : vector<64x128xf32> to vector<64xf32>
      %44 = vector.shape_cast %43 : vector<64xf32> to vector<64x1xf32>
      %cst_33 = arith.constant 1.280000e+02 : f32
      %45 = vector.broadcast %cst_33 : f32 to vector<64x1xf32>
      %46 = arith.divf %44, %45 : vector<64x1xf32>
      %47 = vector.broadcast %46 : vector<64x1xf32> to vector<64x128xf32>
      %48 = arith.subf %42, %47 : vector<64x128xf32>
      %49 = arith.mulf %48, %48 : vector<64x128xf32>
      %cst_34 = arith.constant dense<0.000000e+00> : vector<64xf32>
      %50 = vector.multi_reduction <add>, %49, %cst_34 [1] : vector<64x128xf32> to vector<64xf32>
      %51 = vector.shape_cast %50 : vector<64xf32> to vector<64x1xf32>
      %cst_35 = arith.constant 0.00787401571 : f32
      %52 = vector.broadcast %cst_35 : f32 to vector<64x1xf32>
      %53 = arith.mulf %51, %52 : vector<64x1xf32>
      %54 = math.sqrt %53 : vector<64x1xf32>
      %cst_36 = arith.constant 9.99999997E-7 : f32
      %55 = vector.broadcast %cst_36 : f32 to vector<64x1xf32>
      %56 = arith.addf %54, %55 : vector<64x1xf32>
      %57 = tpu.reciprocal %56 : vector<64x1xf32> -> vector<64x1xf32>
      %58 = vector.broadcast %57 : vector<64x1xf32> to vector<64x128xf32>
      %59 = arith.mulf %48, %58 : vector<64x128xf32>
      %c0_37 = arith.constant 0 : index
      %c0_38 = arith.constant 0 : index
      %c0_39 = arith.constant 0 : index
      %60 = vector.load %arg3[%c0_37, %c0_38, %c0_39] : memref<1x64x128xf32, #tpu.memory_space<vmem>>, vector<1x64x128xf32>
      %61 = vector.shape_cast %60 : vector<1x64x128xf32> to vector<64x128xf32>
      %62 = arith.addf %61, %59 : vector<64x128xf32>
      %c0_40 = arith.constant 0 : index
      %c0_41 = arith.constant 0 : index
      %c0_42 = arith.constant 0 : index
      %63 = vector.load %arg8[%c0_40, %c0_41, %c0_42] : memref<1x64x128xf32, #tpu.memory_space<vmem>>, vector<1x64x128xf32>
      %64 = vector.shape_cast %63 : vector<1x64x128xf32> to vector<64x128xf32>
      %65 = vector.shape_cast %62 : vector<64x128xf32> to vector<1x64x128xf32>
      tpu.vector_store %arg8[%c0_40, %c0_41, %c0_42], %65 {strides = array<i32>} : memref<1x64x128xf32, #tpu.memory_space<vmem>>, vector<1x64x128xf32>,
    } else {
    }
    return
  }
  func.func @transform_0(%arg0: i32, %arg1: i32, %arg2: i32) -> (i32, i32, i32) {
    %c0_i32 = arith.constant 0 : i32
    %c0_i32_0 = arith.constant 0 : i32
    return %arg0, %arg1, %c0_i32 : i32, i32, i32
  }
  func.func @transform_1(%arg0: i32, %arg1: i32, %arg2: i32) -> (i32, i32, i32) {
    %c0_i32 = arith.constant 0 : i32
    %c0_i32_0 = arith.constant 0 : i32
    return %arg0, %arg2, %c0_i32 : i32, i32, i32
  }
  func.func @transform_2(%arg0: i32, %arg1: i32, %arg2: i32) -> (i32, i32) {
    %c0_i32 = arith.constant 0 : i32
    %c0_i32_0 = arith.constant 0 : i32
    %c0_i32_1 = arith.constant 0 : i32
    return %c0_i32, %c0_i32_0 : i32, i32
  }
  func.func @transform_3(%arg0: i32, %arg1: i32, %arg2: i32) -> (i32, i32) {
    %c0_i32 = arith.constant 0 : i32
    %c0_i32_0 = arith.constant 0 : i32
    %c0_i32_1 = arith.constant 0 : i32
    return %c0_i32, %c0_i32_0 : i32, i32
  }
  func.func @transform_4(%arg0: i32, %arg1: i32, %arg2: i32) -> (i32, i32) {
    %c0_i32 = arith.constant 0 : i32
    %c0_i32_0 = arith.constant 0 : i32
    %c0_i32_1 = arith.constant 0 : i32
    return %c0_i32, %c0_i32_0 : i32, i32
  }
  func.func @transform_5(%arg0: i32, %arg1: i32, %arg2: i32) -> (i32, i32, i32) {
    %c0_i32 = arith.constant 0 : i32
    %c0_i32_0 = arith.constant 0 : i32
    return %arg0, %arg1, %c0_i32 : i32, i32, i32
  }
}

</mosaic_0001>

<bundles_post_ra>
// kernel: tpu_custom_call.1
= control target key start
LH: loop header
LB: loop body
LE: loop exit
PB: predicated region body
PF: predicated region fallthrough
CT: control target
= control target key end

     0   :  { %s3205_s0 = inlined_call_operand.hbm [shape: f32[2,128,128], index: 0, kind: input, shape index: {}]   ;;  %s3206_s1 = inlined_call_operand.hbm [shape: f32[2,128,128], index: 1, kind: input, shape index: {}]   ;;  %s3207_s2 = inlined_call_operand.hbm [shape: f32[128,128], index: 2, kind: input, shape index: {}]   ;;  %s3208_s3 = inlined_call_operand.hbm [shape: f32[128,256], index: 3, kind: input, shape index: {}]   ;;  %s3209_s4 = inlined_call_operand.hbm [shape: f32[128,128], index: 4, kind: input, shape index: {}]   ;;  %s3210_s5 = inlined_call_operand.hbm [shape: f32[2,128,128], index: 5, kind: output, shape index: {}]  }
   0x1   :  { %3231 = sst [smem:[#allocation32_spill]] %s3207_s2 }
   0x2   :  { %3232 = sst [smem:[#allocation33_spill]] %s3208_s3 }
   0x3   :  { %3233 = sst [smem:[#allocation34_spill]] %s3209_s4 }
   0x4   :  { %3234 = sst [smem:[#allocation35_spill]] %s3210_s5 }
   0x5   :  { %10 = vsyncpa [#allocation7], 0 }
   0x6   :  { %12 = vsyncpa [#allocation7 + $0x1], 0 }
   0x7   :  { %13 = vsyncpa [#allocation10], 0 }
   0x8   :  { %15 = vsyncpa [#allocation10 + $0x1], 0 }
   0x9   :  { %16 = vsyncpa [#allocation13], 0 }
   0xa   :  { %17 = vsyncpa [#allocation8], 0 }
   0xb   :  { %19 = vsyncpa [#allocation8 + $0x1], 0  ;;  %s2631_s18 = smov 0   ;;  %s2633_s19 = smov 0  }
   0xc   :  { %s2635_s20 = smov 0   ;;  %s2637_s21 = smov 0  }
   0xd   :  { %s2639_s22 = smov 0   ;;  %s2641_s23 = smov 0  }
   0xe   :  { %s2643_s24 = smov 0   ;;  %s2645_s25 = smov 0  }
   0xf   :  { %s2647_s26 = smov 0   ;;  %s2649_s27 = smov 0  }
  0x10   :  { %s2651_s28 = smov 0   ;;  %s2653_s29 = smov 0  }
  0x11   :  { %s2655_s30 = smov 0  }
  0x12 LB: > { %3235 = sst [smem:[#allocation21_spill]] %s2546_s21  ;;  %s2695_s6 = sadd.s32 4294967295, %s2582_s30   ;;  %s2582_s30 = sphi %s2655_s30, %s25_s30   ;;  %s2578_s29 = sphi %s2653_s29, %s3294_s29   ;;  %s2574_s28 = sphi %s2651_s28, %s3293_s28   ;;  %s2570_s27 = sphi %s2649_s27, %s3292_s27   ;;  %s2566_s26 = sphi %s2647_s26, %s3291_s26   ;;  %s2562_s25 = sphi %s2645_s25, %s3290_s25   ;;  %s2558_s24 = sphi %s2643_s24, %s3289_s24   ;;  %s2554_s23 = sphi %s2641_s23, %s3288_s23   ;;  %s2550_s22 = sphi %s2639_s22, %s3287_s22   ;;  %s2546_s21 = sphi %s2637_s21, %s3286_s21   ;;  %s2542_s20 = sphi %s2635_s20, %s3285_s20   ;;  %s2538_s19 = sphi %s2633_s19, %s3284_s19   ;;  %s2534_s18 = sphi %s2631_s18, %s3283_s18  }
  0x13   : > { %3236 = sst [smem:[#allocation22_spill]] %s2558_s24  ;;  %s1726_s7 = sadd.s32 4294967294, %s2582_s30  }
  0x14   : > { %3237 = sst [smem:[#allocation23_spill]] %s2562_s25  ;;  %p66_p0 = scmp.ne.s32.totalorder %s2550_s22, %s2546_s21 }
  0x15   : > { %3238 = sst [smem:[#allocation24_spill]] %s2566_s26  ;;  %p3228_p1 = scmp.eq.s32.totalorder %s2695_s6, 0 }
  0x16   : > { %3239 = sst [smem:[#allocation25_spill]] %s2695_s6  ;;  %p94_p2 = scmp.ne.s32.totalorder %s2538_s19, %s2534_s18 }
  0x17   : > { %p2705_p4 = por %p3228_p1, %p66_p0  ;;  %p189_p5 = scmp.eq.s32.totalorder %s1726_s7, 7 }
  0x18   : > { %p2711_p6 = por %p94_p2, %p3228_p1  ;;  %p1727_p7 = scmp.ge.s32.totalorder %s2582_s30, 1 }
  0x19   : > { %s3240_s8 = scalar_select %p2705_p4, 1, 0 }
  0x1a   : > { %s3242_s9 = scalar_select %p2711_p6, 1, 0 }
  0x1b   : > { %3241 = sst [smem:[#allocation26_spill]] %s3240_s8  ;;  %p2716_p8 = por %p189_p5, %p66_p0 }
  0x1c   : > { %3243 = sst [smem:[#allocation27_spill]] %s3242_s9  ;;  %p196_p9 = scmp.lt.s32.totalorder %s2582_s30, 9 }
  0x1d   : > { %s3244_s10 = scalar_select %p2716_p8, 1, 0 }
  0x1e   : > { %p2721_p10 = pnand %p1727_p7, %p196_p9  ;;  %s2584_s12 = smov [#allocation11]  }
  0x1f   : > { %3245 = sst [smem:[#allocation28_spill]] %s3244_s10  ;;  %s208_s13 = sshll.u32 %s2584_s12, 4  ;;  %s209_s13 = int_to_ptr.vmem [resolvable:$true] %s208_s13 }
  0x20   : > { %p2069_p11 = pneg %p2721_p10  ;;  %s2585_s15 = smov [#allocation12]  }
  0x21   : > { %s221_s16 = sshll.u32 %s2585_s15, 4  ;;  %s2311_s17 = scalar_lea.vmem %s209_s13, 2048  ;;  %s222_s16 = int_to_ptr.vmem [resolvable:$true] %s221_s16 }
  0x22   : > { %p2729_p12 = pnand %p2069_p11, %p3228_p1  ;;  %p2312_p0 = scmp.ne.s32.totalorder %s209_s13, %s2311_s17 }
  0x23   : > { %p2319_p7 = scmp.lt.s32.totalorder %s209_s13, %s209_s13  ;;  %p2320_p9 = scmp.lt.s32.totalorder %s2311_s17, %s2311_s17 }
  0x24   : > { %p2302_p13 = pneg %p2729_p12 }
  0x25   : > { %p2321_p3 = por %p2320_p9, %p2319_p7 }
  0x26   : > { %p2314_p2 = pnand %p2312_p0, %p2302_p13 }
  0x28   : > { %p2315_p5 = pneg %p2314_p2 }
  0x2a   : > { %p2322_p11 = pnand %p2321_p3, %p2315_p5 }
  0x2c   : > { %2325 = shalt.err (!%p2322_p11)
}
  0x2d   : > { %s3214_s18 = smov 128   ;;  %s3216_s7 = smov 8  }
  0x2e   : > { %s3248_s2 = sld [smem:[#allocation32_spill]]  ;;  %s2337_s10 = scalar_lea.vmem %s222_s16, 4096 }
  0x2f   : > { %p2338_p0 = scmp.ne.s32.totalorder %s222_s16, %s2337_s10  ;;  %p2345_p3 = scmp.lt.s32.totalorder %s222_s16, %s222_s16 }
  0x30   : > { %p2346_p5 = scmp.lt.s32.totalorder %s2337_s10, %s2337_s10 }
  0x31   : > { %p2340_p2 = pnand %p2338_p0, %p2302_p13 }
  0x32   : > { %p2347_p9 = por %p2346_p5, %p2345_p3 }
  0x33   : > { %p2341_p7 = pneg %p2340_p2 }
  0x34   : > { %2072 = dma.hbm_to_vmem [thread:$0]  (!%p2729_p12), %s3248_s2, 2048, %s209_s13, [#allocation10], %s3214_s18, %s3214_s18, %s3216_s7  }
  0x35   : > { %p2348_p11 = pnand %p2347_p9, %p2341_p7 }
  0x37   : > { %2351 = shalt.err (!%p2348_p11)
}
  0x38   : > { %s2588_s17 = smov 256   ;;  %s2589_s21 = smov 16  }
  0x39   : > { %s3249_s3 = sld [smem:[#allocation33_spill]]  ;;  %s2590_s13 = smov [#allocation14]  }
  0x3a   : > { %s234_s12 = sshll.u32 %s2590_s13, 4  ;;  %s235_s12 = int_to_ptr.vmem [resolvable:$true] %s234_s12 }
  0x3b   : > { %s2363_s15 = scalar_lea.vmem %s235_s12, 2048  ;;  %p2371_p7 = scmp.lt.s32.totalorder %s235_s12, %s235_s12 }
  0x3c   : > { %p2364_p0 = scmp.ne.s32.totalorder %s235_s12, %s2363_s15  ;;  %p2372_p5 = scmp.lt.s32.totalorder %s2363_s15, %s2363_s15 }
  0x3e   : > { %p2366_p2 = pnand %p2364_p0, %p2302_p13  ;;  %p2373_p9 = por %p2372_p5, %p2371_p7 }
  0x3f   : > { %2075 = dma.hbm_to_vmem [thread:$0]  (!%p2729_p12), %s3249_s3, 4096, %s222_s16, [#allocation13], %s2588_s17, %s2588_s17, %s2589_s21  }
  0x40   : > { %p2367_p3 = pneg %p2366_p2 }
  0x42   : > { %p2374_p11 = pnand %p2373_p9, %p2367_p3 }
  0x44   : > { %2377 = shalt.err (!%p2374_p11)
}
  0x45   : > { %s3250_s4 = sld [smem:[#allocation34_spill]]  ;;  %s37_s26 = sadd.s32 1, %s2570_s27 }
  0x46   : > { %p38_p13 = scmp.ge.s32.totalorder %s37_s26, 2  ;;  %s40_s10 = sadd.s32 1, %s2574_s28 }
  0x47   : > { %s44_s14 = sadd.s32 1, %s2578_s29  ;;  %s53_s16 = sadd.s32 1, %s2554_s23 }
  0x48   : > { %s3296_s26 = smov (%p38_p13, %s37_s26), 0  ;;  %s3298_s10 = smov (!%p38_p13, %s40_s10), %s2574_s28 }
  0x49   : > { %3251 = sst [smem:[#allocation29_spill]] %s3296_s26  ;;  %p60_p0 = scmp.ne.s32.totalorder %s2554_s23, %s2550_s22 }
  0x4a   : > { %p3229_p2 = scmp.eq.s32.totalorder %s2582_s30, 0  ;;  %p42_p3 = scmp.ge.s32.totalorder %s3298_s10, 2 }
  0x4b   : > { %2078 = dma.hbm_to_vmem [thread:$0]  (!%p2729_p12), %s3250_s4, 2048, %s235_s12, [#allocation13], %s3214_s18, %s3214_s18, %s3216_s7  }
  0x4c   : > { %s77_s17 = ssub.s32 %s2570_s27, %s3296_s26  ;;  %p2779_p12 = por %p3229_p2, %p60_p0 }
  0x4d   : > { %p3253_p7 = scmp.eq.s32.totalorder %s2695_s6, 7  ;;  %s3300_s10 = smov (%p42_p3, %s3298_s10), 0 }
  0x4e   : > { %3256 = sst [smem:[#allocation31_spill]] %s3300_s10  ;;  %s3302_s14 = smov (!%p42_p3, %s44_s14), %s2578_s29 }
  0x4f   : > { %p2785_p5 = por %p3253_p7, %p60_p0  ;;  %s49_s15 = ssub.s32 %s2574_s28, %s3300_s10 }
  0x50   : > { %p3230_p9 = scmp.lt.s32.totalorder %s2582_s30, 8  ;;  %p46_p11 = scmp.ge.s32.totalorder %s3302_s14, 2 }
  0x51   : > { %s3254_s12 = scalar_select %p2785_p5, 1, 0 }
  0x52   : > { %s248_s5 = sand.u32 1, %s2554_s23   ;;  %s3304_s14 = smov (%p46_p11, %s3302_s14), 0 }
  0x53   : > { %3255 = sst [smem:[#allocation30_spill]] %s3254_s12  ;;  %s1732_s21 = sshll.u32 %s248_s5, 6 }
  0x54   : > { %s1733_s18 = sshll.u32 %s2574_s28, 3  ;;  %s48_s7 = ssub.s32 %s2578_s29, %s3304_s14 }
  0x55   : > { %s1734_s2 = sshll.u32 %s2578_s29, 4  ;;  %s50_s3 = sor.u32 %s49_s15, %s48_s7 }
  0x56   : > { %s2802_s4 = sor.u32 %s77_s17, %s48_s7  ;;  %p51_p13 = scmp.eq.s32.totalorder %s50_s3, 0 }
  0x57   : > { %s258_s10 = sadd.s32 %s1734_s2, %s1733_s18  ;;  %s252_s26 = scalar_lea.vmem [#allocation6], %s1732_s21 }
  0x58   : > { %s261_s12 = sshll.u32 %s252_s26, 4  ;;  %s1735_s24 = sshll.u32 %s258_s10, 7  ;;  %s262_s12 = int_to_ptr.vmem [resolvable:$true] %s261_s12 }
  0x59   : > { %s2806_s25 = scalar_select %p51_p13, %s2554_s23, %s53_s16  }
  0x5a   : > { %s260_s8 = scalar_lea.hbm %s3205_s0, %s1735_s24  ;;  %p2815_p3 = pnand %p3230_p9, %p2779_p12 }
  0x5b   : > { %s1737_s3 = sshll.u32 %s2570_s27, 3  ;;  %s249_s18 = scalar_lea.sflag [#allocation7], %s248_s5 }
  0x5c   : > { %s281_s7 = sadd.s32 %s1737_s3, %s1734_s2  ;;  %p2380_p7 = pneg %p2815_p3 }
  0x5d   : > { %s2391_s26 = scalar_lea.vmem %s262_s12, 1024  ;;  %s2591_s10 = smov [#allocation6]  }
  0x5e   : > { %p2392_p11 = scmp.ne.s32.totalorder %s262_s12, %s2391_s26  ;;  %s2396_s16 = sshll.u32 %s2591_s10, 4  ;;  %s2397_s16 = int_to_ptr.vmem [resolvable:$false] %s2396_s16 }
  0x5f   : > { %s2398_s24 = scalar_lea.vmem %s2397_s16, 2048  ;;  %p2399_p2 = scmp.lt.s32.totalorder %s262_s12, %s2397_s16 }
  0x60   : > { %p2394_p13 = pnand %p2392_p11, %p2380_p7  ;;  %p2400_p0 = scmp.lt.s32.totalorder %s2398_s24, %s2391_s26 }
  0x62   : > { %p2395_p1 = pneg %p2394_p13  ;;  %p2401_p12 = por %p2400_p0, %p2399_p2 }
  0x64   : > { %p2402_p9 = pnand %p2401_p12, %p2395_p1 }
  0x66   : > { %2405 = shalt.err (!%p2402_p9)
}
  0x67   : > { %s3258_s6 = smov 8   ;;  %s3259_s2 = smov 128  }
  0x68   : > { %2082 = dma.hbm_to_vmem [thread:$0]  (!%p2815_p3), %s260_s8, 1024, %s262_s12, %s249_s18, %s3259_s2, %s3259_s2, %s3258_s6  }
  0x69   : > { %s1739_s9 = sshll.u32 %s281_s7, 7  ;;  %s81_s17 = sadd.s32 1, %s2542_s20 }
  0x6a   : > { %p3260_p2 = scmp.eq.s32.totalorder %s2802_s4, 0  ;;  %p88_p1 = scmp.ne.s32.totalorder %s2542_s20, %s2538_s19 }
  0x6b   : > { %s271_s5 = sand.u32 1, %s2582_s30   ;;  %s283_s3 = scalar_lea.hbm %s3206_s1, %s1739_s9 }
  0x6c   : > { %s2831_s13 = scalar_select %p3260_p2, %s2542_s20, %s81_s17  }
  0x6d   : > { %s273_s26 = sand.u32 1, %s2542_s20   ;;  %p3261_p9 = scmp.eq.s32.totalorder %s2582_s30, 0 }
  0x6e   : > { %s1736_s10 = sshll.u32 %s273_s26, 6  ;;  %p3262_p7 = scmp.lt.s32.totalorder %s2582_s30, 8 }
  0x6f   : > { %p90_p0 = por %p88_p1, %p3261_p9  ;;  %s275_s16 = scalar_lea.vmem [#allocation9], %s1736_s10 }
  0x70   : > { %s284_s24 = sshll.u32 %s275_s16, 4  ;;  %s272_s4 = scalar_lea.sflag [#allocation10], %s271_s5  ;;  %s285_s24 = int_to_ptr.vmem [resolvable:$true] %s284_s24 }
  0x71   : > { %p2844_p11 = pnand %p3262_p7, %p90_p0  ;;  %s2419_s12 = scalar_lea.vmem %s285_s24, 1024 }
  0x72   : > { %p2420_p13 = scmp.ne.s32.totalorder %s285_s24, %s2419_s12  ;;  %s2592_s7 = smov [#allocation9]  }
  0x73   : > { %p2408_p3 = pneg %p2844_p11  ;;  %s2424_s18 = sshll.u32 %s2592_s7, 4  ;;  %s2425_s18 = int_to_ptr.vmem [resolvable:$false] %s2424_s18 }
  0x74   : > { %s2426_s9 = scalar_lea.vmem %s2425_s18, 2048  ;;  %p2427_p1 = scmp.lt.s32.totalorder %s285_s24, %s2425_s18 }
  0x75   : > { %p2422_p12 = pnand %p2420_p13, %p2408_p3  ;;  %p2428_p9 = scmp.lt.s32.totalorder %s2426_s9, %s2419_s12 }
  0x77   : > { %p2423_p2 = pneg %p2422_p12  ;;  %p2429_p8 = por %p2428_p9, %p2427_p1 }
  0x79   : > { %p2430_p0 = pnand %p2429_p8, %p2423_p2 }
  0x7b   : > { %2433 = shalt.err (!%p2430_p0)
}
  0x7c   : > { %2085 = dma.hbm_to_vmem [thread:$0]  (!%p2844_p11), %s283_s3, 1024, %s285_s24, %s272_s4, %s3259_s2, %s3259_s2, %s3258_s6  }
  0x7d   : > { %296 = sbr.rel (%p2721_p10) target bundleno = 2093 (0x82d), region = 40  ;;  %s2858_s5 = sand.u32 (!%p2721_p10), 1, %s2550_s22  }
  0x7e   : > { %s1741_s21 = sshll.u32 (!%p2721_p10), %s2858_s5, 6  ;;  %s299_s15 = scalar_lea.sflag (!%p2721_p10), [#allocation7], %s2858_s5 }
  0x7f   : > { %s2862_s26 = scalar_lea.vmem (!%p2721_p10), [#allocation6], %s1741_s21 }
  0x82   : > { %2513 = dma.done.wait (%p2705_p4), %s299_s15, 1024  }
  0x83   : > { %2515 = vsyncadd (%p2705_p4), %s299_s15, 4294966272  ;;  %s3265_s10 = sld [smem:[#allocation25_spill]]  ;;  %s309_s2 = sand.u32 1, %s2538_s19  }
  0x84   : > { %s1742_s3 = sshll.u32 %s309_s2, 6 }
  0x85   : > { %s2870_s24 = scalar_lea.vmem [#allocation9], %s1742_s3 }
  0x89   : > { %s307_s11 = sand.u32 1, %s3265_s10  }
  0x8a   : > { %s308_s16 = scalar_lea.sflag [#allocation10], %s307_s11 }
  0x8b   : > { %2517 = dma.done.wait (%p2711_p6), %s308_s16, 1024  }
  0x8c   : > { %2519 = vsyncadd (%p2711_p6), %s308_s16, 4294966272  ;;  %p3267_p8 = scmp.eq.s32.totalorder %s3265_s10, 0 }
  0x8e   : > { %2521 = dma.done.wait (%p3267_p8), [#allocation10], 2048   ;;  %p3268_p10 = pmov %p3267_p8 }
  0x8f   : > { %p3269_p4 = pmov %p3267_p8 }
  0x90   : > { %2523 = vsyncadd (%p3268_p10), [#allocation10], 4294965248 }
  0x91   : > { %2525 = dma.done.wait (%p3269_p4), [#allocation13], 6144   ;;  %p3270_p7 = pmov %p3269_p4 }
  0x92   : > { %s2884_s8 = scalar_lea.vmem [#allocation15], %s1741_s21  ;;  %s3271_s4 = sld [smem:[#allocation22_spill]] }
  0x93   : > { %2527 = vsyncadd (%p3270_p7), [#allocation13], 4294961152 }
  0x98   : > { %p1747_p11 = scmp.ne.s32.totalorder %s3271_s4, 0 }
  0x9a   : > { %361 = sbr.rel (%p1747_p11) target bundleno = 395 (0x18b), region = 64 }
  0x9f   : > { %v385_v0 = vld [vmem:[#allocation11 + $0x78] sm:$0xff]  ;;  %v384_v1 = vld [vmem:[#allocation11 + $0x70] sm:$0xff]  ;;  %v383_v2 = vld [vmem:[#allocation11 + $0x68] sm:$0xff]  ;;  %vm507_vm0 = vcmask 7168   ;;  %v2593_v24 = vmov -inf   ;;  %v2594_v25 = vmov 0.0  }
  0xa0   : > { %1843 = vmatprep.subr.mxu0 %v385_v0  ;;  %1987 = vmatprep.subr.mxu1 %v385_v0  ;;  %v382_v3 = vld [vmem:[#allocation11 + $0x60] sm:$0xff]  ;;  %v381_v4 = vld [vmem:[#allocation11 + $0x58] sm:$0xff]  ;;  %v380_v5 = vld [vmem:[#allocation11 + $0x50] sm:$0xff]  ;;  %508 = vst.msk [vmem:[#allocation3] sm:$0xff] %vm507_vm0, %v2593_v24 }
  0xa1   : > { %1844 = vmatpush3.msra.mxu0 %v385_v0  ;;  %2003 = vmatpush3.msra.mxu1 %v385_v0  ;;  %v379_v6 = vld [vmem:[#allocation11 + $0x48] sm:$0xff]  ;;  %v378_v7 = vld [vmem:[#allocation11 + $0x40] sm:$0xff]  ;;  %v377_v8 = vld [vmem:[#allocation11 + $0x38] sm:$0xff]  ;;  %509 = vst.msk [vmem:[#allocation3 + $0x8] sm:$0xff] %vm507_vm0, %v2593_v24 }
  0xa2   : > { %1845 = vmatprep.subr.mxu0 %v384_v1  ;;  %1988 = vmatprep.subr.mxu1 %v384_v1  ;;  %v376_v9 = vld [vmem:[#allocation11 + $0x30] sm:$0xff]  ;;  %v375_v10 = vld [vmem:[#allocation11 + $0x28] sm:$0xff]  ;;  %v374_v11 = vld [vmem:[#allocation11 + $0x20] sm:$0xff]  ;;  %510 = vst.msk [vmem:[#allocation3 + $0x10] sm:$0xff] %vm507_vm0, %v2593_v24 }
  0xa3   : > { %1846 = vmatpush3.msra.mxu0 %v384_v1  ;;  %2004 = vmatpush3.msra.mxu1 %v384_v1  ;;  %v373_v12 = vld [vmem:[#allocation11 + $0x18] sm:$0xff]  ;;  %v372_v13 = vld [vmem:[#allocation11 + $0x10] sm:$0xff]  ;;  %v371_v14 = vld [vmem:[#allocation11 + $0x8] sm:$0xff]  ;;  %511 = vst.msk [vmem:[#allocation3 + $0x18] sm:$0xff] %vm507_vm0, %v2593_v24 }
  0xa4   : > { %1847 = vmatprep.subr.mxu0 %v383_v2  ;;  %1989 = vmatprep.subr.mxu1 %v383_v2  ;;  %v370_v15 = vld [vmem:[#allocation11] sm:$0xff]  ;;  %v363_v18 = vld [vmem:[%s2862_s26 + $0x8] sm:$0xff]  ;;  %v364_v20 = vld [vmem:[%s2862_s26 + $0x10] sm:$0xff]  ;;  %512 = vst.msk [vmem:[#allocation3 + $0x20] sm:$0xff] %vm507_vm0, %v2593_v24 }
  0xa5   : > { %1848 = vmatpush3.msra.mxu0 %v383_v2  ;;  %2005 = vmatpush3.msra.mxu1 %v383_v2  ;;  %v362_v16 = vld [vmem:[%s2862_s26] sm:$0xff]  ;;  %v367_v19 = vld [vmem:[%s2862_s26 + $0x28] sm:$0xff]  ;;  %v368_v21 = vld [vmem:[%s2862_s26 + $0x30] sm:$0xff]  ;;  %513 = vst.msk [vmem:[#allocation3 + $0x28] sm:$0xff] %vm507_vm0, %v2593_v24 }
  0xa6   : > { %1849 = vmatprep.subr.mxu0 %v382_v3  ;;  %1990 = vmatprep.subr.mxu1 %v382_v3  ;;  %v366_v17 = vld [vmem:[%s2862_s26 + $0x20] sm:$0xff]  ;;  %v365_v22 = vld [vmem:[%s2862_s26 + $0x18] sm:$0xff]  ;;  %514 = vst.msk [vmem:[#allocation3 + $0x30] sm:$0xff] %vm507_vm0, %v2593_v24  ;;  %515 = vst.msk [vmem:[#allocation3 + $0x38] sm:$0xff] %vm507_vm0, %v2593_v24 }
  0xa7   : > { %1850 = vmatpush3.msra.mxu0 %v382_v3  ;;  %2006 = vmatpush3.msra.mxu1 %v382_v3  ;;  %v369_v23 = vld [vmem:[%s2862_s26 + $0x38] sm:$0xff]  ;;  %516 = vst.msk [vmem:[#allocation4] sm:$0xff] %vm507_vm0, %v2594_v25  ;;  %517 = vst.msk [vmem:[#allocation4 + $0x8] sm:$0xff] %vm507_vm0, %v2594_v25 }
  0xa8   : > { %1851 = vmatprep.subr.mxu0 %v381_v4  ;;  %1991 = vmatprep.subr.mxu1 %v381_v4  ;;  %518 = vst.msk [vmem:[#allocation4 + $0x10] sm:$0xff] %vm507_vm0, %v2594_v25  ;;  %519 = vst.msk [vmem:[#allocation4 + $0x18] sm:$0xff] %vm507_vm0, %v2594_v25 }
  0xa9   : > { %1852 = vmatpush3.msra.mxu0 %v381_v4  ;;  %2007 = vmatpush3.msra.mxu1 %v381_v4  ;;  %520 = vst.msk [vmem:[#allocation4 + $0x20] sm:$0xff] %vm507_vm0, %v2594_v25  ;;  %521 = vst.msk [vmem:[#allocation4 + $0x28] sm:$0xff] %vm507_vm0, %v2594_v25 }
  0xaa   : > { %1853 = vmatprep.subr.mxu0 %v380_v5  ;;  %1992 = vmatprep.subr.mxu1 %v380_v5  ;;  %522 = vst.msk [vmem:[#allocation4 + $0x30] sm:$0xff] %vm507_vm0, %v2594_v25  ;;  %523 = vst.msk [vmem:[#allocation4 + $0x38] sm:$0xff] %vm507_vm0, %v2594_v25 }
  0xab   : > { %1854 = vmatpush3.msra.mxu0 %v380_v5  ;;  %2008 = vmatpush3.msra.mxu1 %v380_v5  ;;  %524 = vst [vmem:[#allocation5] sm:$0xff] %v2594_v25  ;;  %525 = vst [vmem:[#allocation5 + $0x18] sm:$0xff] %v2594_v25 }
  0xac   : > { %1855 = vmatprep.subr.mxu0 %v379_v6  ;;  %1993 = vmatprep.subr.mxu1 %v379_v6  ;;  %526 = vst [vmem:[#allocation5 + $0x10] sm:$0xff] %v2594_v25  ;;  %527 = vst [vmem:[#allocation5 + $0x20] sm:$0xff] %v2594_v25 }
  0xad   : > { %1856 = vmatpush3.msra.mxu0 %v379_v6  ;;  %2009 = vmatpush3.msra.mxu1 %v379_v6  ;;  %528 = vst [vmem:[#allocation5 + $0x28] sm:$0xff] %v2594_v25  ;;  %529 = vst [vmem:[#allocation5 + $0x8] sm:$0xff] %v2594_v25 }
  0xae   : > { %1857 = vmatprep.subr.mxu0 %v378_v7  ;;  %1994 = vmatprep.subr.mxu1 %v378_v7  ;;  %530 = vst [vmem:[#allocation5 + $0x30] sm:$0xff] %v2594_v25  ;;  %531 = vst [vmem:[#allocation5 + $0x38] sm:$0xff] %v2594_v25 }
  0xaf   : > { %1858 = vmatpush3.msra.mxu0 %v378_v7  ;;  %2010 = vmatpush3.msra.mxu1 %v378_v7 }
  0xb0   : > { %1859 = vmatprep.subr.mxu0 %v377_v8  ;;  %1995 = vmatprep.subr.mxu1 %v377_v8 }
  0xb1   : > { %1860 = vmatpush3.msra.mxu0 %v377_v8  ;;  %2011 = vmatpush3.msra.mxu1 %v377_v8 }
  0xb2   : > { %1861 = vmatprep.subr.mxu0 %v376_v9  ;;  %1996 = vmatprep.subr.mxu1 %v376_v9 }
  0xb3   : > { %1862 = vmatpush3.msra.mxu0 %v376_v9  ;;  %2012 = vmatpush3.msra.mxu1 %v376_v9 }
  0xb4   : > { %1863 = vmatprep.subr.mxu0 %v375_v10  ;;  %1997 = vmatprep.subr.mxu1 %v375_v10 }
  0xb5   : > { %1864 = vmatpush3.msra.mxu0 %v375_v10  ;;  %2013 = vmatpush3.msra.mxu1 %v375_v10 }
  0xb6   : > { %1865 = vmatprep.subr.mxu0 %v374_v11  ;;  %1998 = vmatprep.subr.mxu1 %v374_v11 }
  0xb7   : > { %1866 = vmatpush3.msra.mxu0 %v374_v11  ;;  %2014 = vmatpush3.msra.mxu1 %v374_v11 }
  0xb8   : > { %1867 = vmatprep.subr.mxu0 %v373_v12  ;;  %1999 = vmatprep.subr.mxu1 %v373_v12 }
  0xb9   : > { %1868 = vmatpush3.msra.mxu0 %v373_v12  ;;  %2015 = vmatpush3.msra.mxu1 %v373_v12 }
  0xba   : > { %1869 = vmatprep.subr.mxu0 %v372_v13  ;;  %2000 = vmatprep.subr.mxu1 %v372_v13 }
  0xbb   : > { %1870 = vmatpush3.msra.mxu0 %v372_v13  ;;  %2016 = vmatpush3.msra.mxu1 %v372_v13 }
  0xbc   : > { %1871 = vmatprep.subr.mxu0 %v371_v14  ;;  %2001 = vmatprep.subr.mxu1 %v371_v14 }
  0xbd   : > { %1872 = vmatpush3.msra.mxu0 %v371_v14  ;;  %2017 = vmatpush3.msra.mxu1 %v371_v14 }
  0xbe   : > { %1873 = vmatprep.subr.mxu0 %v370_v15  ;;  %2002 = vmatprep.subr.mxu1 %v370_v15 }
  0xbf   : > { %1874 = vmatpush3.msra.mxu0 %v370_v15  ;;  %2018 = vmatpush3.msra.mxu1 %v370_v15 }
  0xc0   : > { %1875 = vmatprep.mubr.f32.mxu0 %v362_v16  ;;  %1881 = vmatprep.mubr.f32.mxu1 %v366_v17 }
  0xc1   : > { %1876 = vmatmul.mubr.f32.vlgmr.msra.gmra.mxu0 %v363_v18  ;;  %1882 = vmatmul.mubr.f32.vlgmr.msra.gmra.mxu1 %v367_v19 }
  0xc2   : > { %1878 = vmatprep.mubr.f32.mxu0 %v364_v20  ;;  %1884 = vmatprep.mubr.f32.mxu1 %v368_v21 }
  0xc5   : > { %1879 = vmatmul.mubr.f32.gmra.mxu0 %v365_v22  ;;  %1885 = vmatmul.mubr.f32.gmra.mxu1 %v369_v23 }
 0x181   : > { %v1877_v26 = vpop.f32.mrf.mxu0  ;;  %v1883_v27 = vpop.f32.mrf.mxu1 }
 0x182   : > { %v492_v28 = vmul.f32 0.088388346, %v1877_v26  ;;  %v496_v29 = vmul.f32 0.088388346, %v1883_v27 }
 0x183   : > { %v452_v30 = vpop.f32.mrf.mxu0  ;;  %v472_v31 = vpop.f32.mrf.mxu1 }
 0x184   : > { %500 = vst [vmem:[#allocation2] sm:$0xff] %v492_v28  ;;  %504 = vst [vmem:[#allocation2 + $0x20] sm:$0xff] %v496_v29  ;;  %v491_v32 = vmul.f32 0.088388346, %v452_v30  ;;  %v495_v33 = vmul.f32 0.088388346, %v472_v31 }
 0x185   : > { %v1880_v34 = vpop.f32.mrf.mxu0  ;;  %v1886_v35 = vpop.f32.mrf.mxu1 }
 0x186   : > { %499 = vst [vmem:[#allocation2 + $0x30] sm:$0xff] %v491_v32  ;;  %503 = vst [vmem:[#allocation2 + $0x8] sm:$0xff] %v495_v33  ;;  %v494_v36 = vmul.f32 0.088388346, %v1880_v34  ;;  %v498_v37 = vmul.f32 0.088388346, %v1886_v35 }
 0x187   : > { %v462_v38 = vpop.f32.mrf.mxu0  ;;  %v482_v39 = vpop.f32.mrf.mxu1 }
 0x188   : > { %502 = vst [vmem:[#allocation2 + $0x10] sm:$0xff] %v494_v36  ;;  %506 = vst [vmem:[#allocation2 + $0x38] sm:$0xff] %v498_v37  ;;  %v493_v40 = vmul.f32 0.088388346, %v462_v38  ;;  %v497_v41 = vmul.f32 0.088388346, %v482_v39 }
 0x18a   : > { %501 = vst [vmem:[#allocation2 + $0x18] sm:$0xff] %v493_v40  ;;  %505 = vst [vmem:[#allocation2 + $0x28] sm:$0xff] %v497_v41 }
 0x18b PF: > { %v571_v42 = vld [vmem:[#allocation12 + $0xf8] sm:$0xff]  ;;  %v570_v43 = vld [vmem:[#allocation12 + $0xf0] sm:$0xff]  ;;  %v569_v44 = vld [vmem:[#allocation12 + $0xe8] sm:$0xff]  ;;  %v2595_v46 = vmov 0.0   ;;  %vm806_vm1 = vcmask 523264   ;;  %vm975_vm2 = vcmask 7168  }
 0x18c   : > { %572 = vmatprep.subr.mxu0 %v571_v42  ;;  %v568_v45 = vld [vmem:[#allocation12 + $0xe0] sm:$0xff]  ;;  %636 = vmatprep.mubr.f32.mxu0 %v2595_v46  ;;  %v567_v47 = vld [vmem:[#allocation12 + $0xd8] sm:$0xff]  ;;  %v566_v48 = vld [vmem:[#allocation12 + $0xd0] sm:$0xff]  ;;  %s3272_s12 = sld [smem:[#allocation22_spill]] }
 0x18d   : > { %573 = vmatpush1.msra.mxu0 %v570_v43  ;;  %v565_v49 = vld [vmem:[#allocation12 + $0xc8] sm:$0xff]  ;;  %v564_v50 = vld [vmem:[#allocation12 + $0xc0] sm:$0xff]  ;;  %v563_v51 = vld [vmem:[#allocation12 + $0xb8] sm:$0xff] }
 0x18e   : > { %574 = vmatprep.subr.mxu0 %v569_v44  ;;  %v562_v52 = vld [vmem:[#allocation12 + $0xb0] sm:$0xff]  ;;  %v561_v53 = vld [vmem:[#allocation12 + $0xa8] sm:$0xff]  ;;  %v560_v54 = vld [vmem:[#allocation12 + $0xa0] sm:$0xff] }
 0x18f   : > { %575 = vmatpush1.msra.mxu0 %v568_v45  ;;  %v559_v55 = vld [vmem:[#allocation12 + $0x98] sm:$0xff]  ;;  %v558_v56 = vld [vmem:[#allocation12 + $0x90] sm:$0xff]  ;;  %v557_v57 = vld [vmem:[#allocation12 + $0x88] sm:$0xff] }
 0x190   : > { %576 = vmatprep.subr.mxu0 %v567_v47  ;;  %v556_v58 = vld [vmem:[#allocation12 + $0x80] sm:$0xff]  ;;  %v555_v59 = vld [vmem:[#allocation12 + $0x78] sm:$0xff]  ;;  %v554_v60 = vld [vmem:[#allocation12 + $0x70] sm:$0xff] }
 0x191   : > { %577 = vmatpush1.msra.mxu0 %v566_v48  ;;  %v553_v61 = vld [vmem:[#allocation12 + $0x68] sm:$0xff]  ;;  %v552_v62 = vld [vmem:[#allocation12 + $0x60] sm:$0xff]  ;;  %v551_v63 = vld [vmem:[#allocation12 + $0x58] sm:$0xff] }
 0x192   : > { %578 = vmatprep.subr.mxu0 %v565_v49  ;;  %v550_v0 = vld [vmem:[#allocation12 + $0x50] sm:$0xff]  ;;  %v549_v1 = vld [vmem:[#allocation12 + $0x48] sm:$0xff]  ;;  %v548_v2 = vld [vmem:[#allocation12 + $0x40] sm:$0xff]  ;;  %p1756_p6 = scmp.ne.s32.totalorder %s3272_s12, 1 }
 0x193   : > { %579 = vmatpush1.msra.mxu0 %v564_v50  ;;  %v547_v3 = vld [vmem:[#allocation12 + $0x38] sm:$0xff]  ;;  %v546_v4 = vld [vmem:[#allocation12 + $0x30] sm:$0xff]  ;;  %v545_v5 = vld [vmem:[#allocation12 + $0x28] sm:$0xff] }
 0x194   : > { %580 = vmatprep.subr.mxu0 %v563_v51  ;;  %v544_v6 = vld [vmem:[#allocation12 + $0x20] sm:$0xff]  ;;  %v543_v7 = vld [vmem:[#allocation12 + $0x18] sm:$0xff]  ;;  %v542_v8 = vld [vmem:[#allocation12 + $0x10] sm:$0xff] }
 0x195   : > { %581 = vmatpush1.msra.mxu0 %v562_v52  ;;  %v541_v9 = vld [vmem:[#allocation12 + $0x8] sm:$0xff]  ;;  %v540_v10 = vld [vmem:[#allocation12] sm:$0xff]  ;;  %v534_v13 = vld [vmem:[%s2870_s24 + $0x10] sm:$0xff] }
 0x196   : > { %582 = vmatprep.subr.mxu0 %v561_v53  ;;  %v532_v11 = vld [vmem:[%s2870_s24] sm:$0xff]  ;;  %v533_v12 = vld [vmem:[%s2870_s24 + $0x8] sm:$0xff]  ;;  %v535_v14 = vld [vmem:[%s2870_s24 + $0x18] sm:$0xff] }
 0x197   : > { %583 = vmatpush1.msra.mxu0 %v560_v54  ;;  %v536_v15 = vld [vmem:[%s2870_s24 + $0x20] sm:$0xff]  ;;  %v537_v16 = vld [vmem:[%s2870_s24 + $0x28] sm:$0xff]  ;;  %v538_v17 = vld [vmem:[%s2870_s24 + $0x30] sm:$0xff] }
 0x198   : > { %584 = vmatprep.subr.mxu0 %v559_v55  ;;  %v539_v18 = vld [vmem:[%s2870_s24 + $0x38] sm:$0xff]  ;;  %v685_v19 = vld [vmem:[#allocation2 + $0x30] sm:$0xff]  ;;  %v686_v36 = vld [vmem:[#allocation2] sm:$0xff] }
 0x199   : > { %585 = vmatpush1.msra.mxu0 %v558_v56  ;;  %1903 = vmatprep.mubr.f32.mxu1 %v685_v19  ;;  %v687_v37 = vld [vmem:[#allocation2 + $0x18] sm:$0xff]  ;;  %v688_v38 = vld [vmem:[#allocation2 + $0x10] sm:$0xff]  ;;  %v689_v39 = vld [vmem:[#allocation2 + $0x8] sm:$0xff] }
 0x19a   : > { %586 = vmatprep.subr.mxu0 %v557_v57  ;;  %v690_v40 = vld [vmem:[#allocation2 + $0x20] sm:$0xff]  ;;  %v691_v41 = vld [vmem:[#allocation2 + $0x28] sm:$0xff]  ;;  %v692_v42 = vld [vmem:[#allocation2 + $0x38] sm:$0xff] }
 0x19b   : > { %587 = vmatpush1.msra.mxu0 %v556_v58  ;;  %v2596_v58 = vmov 0  }
 0x19c   : > { %588 = vmatprep.subr.mxu0 %v555_v59  ;;  %2216 = vset.pattern.permute.xlu0 %v2596_v58 }
 0x19d   : > { %589 = vmatpush1.msra.mxu0 %v554_v60  ;;  %2217 = vset.pattern.permute.xlu1 %v2596_v58  ;;  %v798_v60 = vld [vmem:[#allocation3] sm:$0xff] }
 0x19e   : > { %590 = vmatprep.subr.mxu0 %v553_v61 }
 0x19f   : > { %591 = vmatpush1.msra.mxu0 %v552_v62 }
 0x1a0   : > { %592 = vmatprep.subr.mxu0 %v551_v63  ;;  %v799_v63 = vld [vmem:[#allocation3 + $0x8] sm:$0xff] }
 0x1a1   : > { %593 = vmatpush1.msra.mxu0 %v550_v0  ;;  %v800_v0 = vld [vmem:[#allocation3 + $0x10] sm:$0xff] }
 0x1a2   : > { %594 = vmatprep.subr.mxu0 %v549_v1 }
 0x1a3   : > { %595 = vmatpush1.msra.mxu0 %v548_v2 }
 0x1a4   : > { %596 = vmatprep.subr.mxu0 %v547_v3 }
 0x1a5   : > { %597 = vmatpush1.msra.mxu0 %v546_v4 }
 0x1a6   : > { %598 = vmatprep.subr.mxu0 %v545_v5 }
 0x1a7   : > { %599 = vmatpush1.msra.mxu0 %v544_v6 }
 0x1a8   : > { %600 = vmatprep.subr.mxu0 %v543_v7  ;;  %v801_v7 = vld [vmem:[#allocation3 + $0x18] sm:$0xff] }
 0x1a9   : > { %601 = vmatpush1.msra.mxu0 %v542_v8  ;;  %v802_v8 = vld [vmem:[#allocation3 + $0x20] sm:$0xff] }
 0x1aa   : > { %602 = vmatprep.subr.mxu0 %v541_v9 }
 0x1ab   : > { %603 = vmatpush1.msra.mxu0 %v540_v10 }
 0x1ac   : > { %637 = vmatmul.mubr.f32.vlgmr.msra.gmra.mxu0 %v532_v11 }
 0x1ad   : > { %642 = vmatprep.mubr.f32.mxu0 %v2595_v46 }
 0x1b0   : > { %643 = vmatmul.mubr.f32.gmra.mxu0 %v533_v12 }
 0x1b1   : > { %648 = vmatprep.mubr.f32.mxu0 %v2595_v46 }
 0x1b4   : > { %649 = vmatmul.mubr.f32.gmra.mxu0 %v534_v13  ;;  %v803_v13 = vld [vmem:[#allocation3 + $0x28] sm:$0xff] }
 0x1b5   : > { %654 = vmatprep.mubr.f32.mxu0 %v2595_v46 }
 0x1b8   : > { %655 = vmatmul.mubr.f32.gmra.mxu0 %v535_v14  ;;  %v2962_v14 = vld [vmem:[#allocation3 + $0x30] sm:$0xff] }
 0x1b9   : > { %660 = vmatprep.mubr.f32.mxu0 %v2595_v46 }
 0x1bc   : > { %661 = vmatmul.mubr.f32.gmra.mxu0 %v536_v15 }
 0x1bd   : > { %666 = vmatprep.mubr.f32.mxu0 %v2595_v46 }
 0x1c0   : > { %667 = vmatmul.mubr.f32.gmra.mxu0 %v537_v16 }
 0x1c1   : > { %672 = vmatprep.mubr.f32.mxu0 %v2595_v46 }
 0x1c4   : > { %673 = vmatmul.mubr.f32.gmra.mxu0 %v538_v17 }
 0x1c5   : > { %678 = vmatprep.mubr.f32.mxu0 %v2595_v46 }
 0x1c8   : > { %679 = vmatmul.mubr.f32.gmra.mxu0 %v539_v18 }
 0x26c   : > { %v638_v20 = vpop.f32.mrf.mxu0 }
 0x26e   : > { %v640_v21 = vpop.f32.mrf.mxu0 }
 0x270   : > { %v644_v22 = vpop.f32.mrf.mxu0 }
 0x272   : > { %v646_v23 = vpop.f32.mrf.mxu0 }
 0x274   : > { %v650_v24 = vpop.f32.mrf.mxu0 }
 0x276   : > { %v652_v25 = vpop.f32.mrf.mxu0 }
 0x278   : > { %v656_v26 = vpop.f32.mrf.mxu0 }
 0x27a   : > { %v658_v27 = vpop.f32.mrf.mxu0 }
 0x27c   : > { %v662_v28 = vpop.f32.mrf.mxu0 }
 0x27e   : > { %v664_v29 = vpop.f32.mrf.mxu0 }
 0x280   : > { %v668_v30 = vpop.f32.mrf.mxu0 }
 0x282   : > { %v670_v31 = vpop.f32.mrf.mxu0 }
 0x284   : > { %v674_v32 = vpop.f32.mrf.mxu0 }
 0x286   : > { %v676_v33 = vpop.f32.mrf.mxu0 }
 0x288   : > { %v680_v34 = vpop.f32.mrf.mxu0 }
 0x289   : > { %1887 = vmatprep.subr.mxu1 %v680_v34 }
 0x28a   : > { %1888 = vmatpush3.xpose.msra.mxu1 %v680_v34  ;;  %v682_v35 = vpop.f32.mrf.mxu0 }
 0x28b   : > { %1889 = vmatprep.subr.mxu1 %v674_v32 }
 0x28e   : > { %1890 = vmatpush3.xpose.msra.mxu1 %v674_v32 }
 0x28f   : > { %1891 = vmatprep.subr.mxu1 %v668_v30 }
 0x292   : > { %1892 = vmatpush3.xpose.msra.mxu1 %v668_v30 }
 0x293   : > { %1893 = vmatprep.subr.mxu1 %v662_v28 }
 0x296   : > { %1894 = vmatpush3.xpose.msra.mxu1 %v662_v28 }
 0x297   : > { %1895 = vmatprep.subr.mxu1 %v656_v26 }
 0x29a   : > { %1896 = vmatpush3.xpose.msra.mxu1 %v656_v26 }
 0x29b   : > { %1897 = vmatprep.subr.mxu1 %v650_v24 }
 0x29e   : > { %1898 = vmatpush3.xpose.msra.mxu1 %v650_v24 }
 0x29f   : > { %1899 = vmatprep.subr.mxu1 %v644_v22 }
 0x2a2   : > { %1900 = vmatpush3.xpose.msra.mxu1 %v644_v22  ;;  %v2969_v22 = vld [vmem:[#allocation3 + $0x38] sm:$0xff] }
 0x2a3   : > { %1901 = vmatprep.subr.mxu1 %v638_v20 }
 0x2a6   : > { %1902 = vmatpush3.xpose.msra.mxu1 %v638_v20 }
 0x2a7   : > { %1915 = vmatprep.subr.mxu1 %v682_v35 }
 0x2a9   : > { %1904 = vmatmul.mubr.f32.vlgmr.msra.gmra.mxu1 %v686_v36 }
 0x2aa   : > { %1916 = vmatpush3.msra.mxu1 %v682_v35  ;;  %1906 = vmatprep.mubr.f32.mxu1 %v687_v37 }
 0x2ab   : > { %1917 = vmatprep.subr.mxu1 %v676_v33 }
 0x2ac   : > { %1918 = vmatpush3.msra.mxu1 %v676_v33 }
 0x2ad   : > { %1907 = vmatmul.mubr.f32.gmra.mxu1 %v688_v38  ;;  %1919 = vmatprep.subr.mxu1 %v670_v31 }
 0x2ae   : > { %1920 = vmatpush3.msra.mxu1 %v670_v31  ;;  %1909 = vmatprep.mubr.f32.mxu1 %v689_v39 }
 0x2af   : > { %1921 = vmatprep.subr.mxu1 %v664_v29 }
 0x2b0   : > { %1922 = vmatpush3.msra.mxu1 %v664_v29 }
 0x2b1   : > { %1923 = vmatprep.subr.mxu1 %v658_v27  ;;  %1910 = vmatmul.mubr.f32.gmra.mxu1 %v690_v40 }
 0x2b2   : > { %1924 = vmatpush3.msra.mxu1 %v658_v27  ;;  %1912 = vmatprep.mubr.f32.mxu1 %v691_v41 }
 0x2b3   : > { %1925 = vmatprep.subr.mxu1 %v652_v25 }
 0x2b4   : > { %1926 = vmatpush3.msra.mxu1 %v652_v25 }
 0x2b5   : > { %1927 = vmatprep.subr.mxu1 %v646_v23  ;;  %1913 = vmatmul.mubr.f32.gmra.mxu1 %v692_v42 }
 0x2b6   : > { %1928 = vmatpush3.msra.mxu1 %v646_v23 }
 0x2b7   : > { %1929 = vmatprep.subr.mxu1 %v640_v21 }
 0x2b8   : > { %1930 = vmatpush3.msra.mxu1 %v640_v21 }
 0x369   : > { %v2927_v43 = vpop.f32.mrf.mxu1 }
 0x36a   : > { %v810_v48 = vsel %vm806_vm1, %v2927_v43, -inf }
 0x36b   : > { %v2929_v44 = vpop.f32.mrf.mxu1 }
 0x36c   : > { %v807_v45 = vsel %vm806_vm1, %v2929_v44, -inf }
 0x36d   : > { %808 = vmax.xlane.f32.xlu0 %v807_v45  ;;  %v2933_v46 = vpop.f32.mrf.mxu1 }
 0x36e   : > { %v816_v52 = vsel %vm806_vm1, %v2933_v46, -inf }
 0x36f   : > { %v2935_v47 = vpop.f32.mrf.mxu1 }
 0x370   : > { %v813_v49 = vsel %vm806_vm1, %v2935_v47, -inf }
 0x371   : > { %811 = vmax.xlane.f32.xlu0 %v810_v48  ;;  %814 = vmax.xlane.f32.xlu1 %v813_v49  ;;  %v2941_v50 = vpop.f32.mrf.mxu1 }
 0x372   : > { %v822_v55 = vsel %vm806_vm1, %v2941_v50, -inf }
 0x373   : > { %v2943_v51 = vpop.f32.mrf.mxu1 }
 0x374   : > { %v819_v53 = vsel %vm806_vm1, %v2943_v51, -inf }
 0x375   : > { %817 = vmax.xlane.f32.xlu1 %v816_v52  ;;  %820 = vmax.xlane.f32.xlu0 %v819_v53  ;;  %v2949_v54 = vpop.f32.mrf.mxu1 }
 0x376   : > { %v828_v59 = vsel %vm806_vm1, %v2949_v54, -inf }
 0x377   : > { %v2953_v56 = vpop.f32.mrf.mxu1 }
 0x378   : > { %v825_v57 = vsel %vm806_vm1, %v2953_v56, -inf }
 0x379   : > { %823 = vmax.xlane.f32.xlu1 %v822_v55  ;;  %826 = vmax.xlane.f32.xlu0 %v825_v57 }
 0x37d   : > { %829 = vmax.xlane.f32.xlu1 %v828_v59 }
 0x3f6   : > { %v809_v61 = vpop.xlane.xlu0 %808 }
 0x3f7   : > { %v831_v62 = vmax.f32 %v798_v60, %v809_v61 }
 0x3f9   : > { %v839_v1 = vsub.f32 %v798_v60, %v831_v62  ;;  %1185 = vst.msk [vmem:[#allocation3] sm:$0xff] %vm975_vm2, %v831_v62  ;;  %865 = vperm.xlu0 %2216, %v831_v62  }
 0x3fa   : > { %v812_v2 = vpop.xlane.xlu0 %811  ;;  %v815_v3 = vpop.xlane.xlu1 %814 }
 0x3fb   : > { %v847_v4 = vmul.f32 1.442695, %v839_v1  ;;  %v832_v5 = vmax.f32 %v799_v63, %v812_v2  ;;  %v833_v6 = vmax.f32 %v800_v0, %v815_v3 }
 0x3fd   : > { %2218 = vpow2.f32 %v847_v4  ;;  %1186 = vst.msk [vmem:[#allocation3 + $0x8] sm:$0xff] %vm975_vm2, %v832_v5  ;;  %1187 = vst.msk [vmem:[#allocation3 + $0x10] sm:$0xff] %vm975_vm2, %v833_v6  ;;  %870 = vperm.xlu1 %2217, %v832_v5   ;;  %v840_v18 = vsub.f32 %v799_v63, %v832_v5  ;;  %v841_v27 = vsub.f32 %v800_v0, %v833_v6 }
 0x3fe   : > { %v818_v9 = vpop.xlane.xlu1 %817  ;;  %v821_v10 = vpop.xlane.xlu0 %820 }
 0x3ff   : > { %v834_v11 = vmax.f32 %v801_v7, %v818_v9  ;;  %v835_v12 = vmax.f32 %v802_v8, %v821_v10  ;;  %v849_v26 = vmul.f32 1.442695, %v840_v18  ;;  %v851_v32 = vmul.f32 1.442695, %v841_v27 }
 0x401   : > { %v842_v15 = vsub.f32 %v801_v7, %v834_v11  ;;  %1188 = vst.msk [vmem:[#allocation3 + $0x18] sm:$0xff] %vm975_vm2, %v834_v11  ;;  %880 = vperm.xlu1 %2217, %v834_v11   ;;  %1189 = vst.msk [vmem:[#allocation3 + $0x20] sm:$0xff] %vm975_vm2, %v835_v12  ;;  %v843_v33 = vsub.f32 %v802_v8, %v835_v12 }
 0x402   : > { %v824_v16 = vpop.xlane.xlu1 %823  ;;  %v827_v17 = vpop.xlane.xlu0 %826 }
 0x403   : > { %v853_v19 = vmul.f32 1.442695, %v842_v15  ;;  %v836_v20 = vmax.f32 %v803_v13, %v824_v16  ;;  %v2967_v21 = vmax.f32 %v2962_v14, %v827_v17  ;;  %v855_v34 = vmul.f32 1.442695, %v843_v33 }
 0x405   : > { %2220 = vpow2.f32 %v853_v19  ;;  %v844_v23 = vsub.f32 %v803_v13, %v836_v20  ;;  %1190 = vst.msk [vmem:[#allocation3 + $0x28] sm:$0xff] %vm975_vm2, %v836_v20  ;;  %875 = vperm.xlu1 %2217, %v833_v6   ;;  %v845_v24 = vsub.f32 %v2962_v14, %v2967_v21  ;;  %1191 = vst.msk [vmem:[#allocation3 + $0x30] sm:$0xff] %vm975_vm2, %v2967_v21 }
 0x406   : > { %v830_v25 = vpop.xlane.xlu1 %829 }
 0x407   : > { %v857_v28 = vmul.f32 1.442695, %v844_v23  ;;  %v2977_v29 = vmax.f32 %v2969_v22, %v830_v25  ;;  %v859_v16 = vmul.f32 1.442695, %v845_v24  ;;  %v927_v24 = vld [vmem:[#allocation4] sm:$0xff] }
 0x409   : > { %2222 = vpow2.f32 %v857_v28  ;;  %890 = vperm.xlu1 %2217, %v836_v20   ;;  %v846_v30 = vsub.f32 %v2969_v22, %v2977_v29  ;;  %1192 = vst.msk [vmem:[#allocation3 + $0x38] sm:$0xff] %vm975_vm2, %v2977_v29  ;;  %v928_v22 = vld [vmem:[#allocation4 + $0x8] sm:$0xff] }
 0x40a   : > { %v2983_v31 = vpop.eup %2218  ;;  %2224 = vpow2.f32 %v849_v26 }
 0x40b   : > { %994 = vperm.xlu0 %2216, %v2983_v31   ;;  %2226 = vpow2.f32 %v851_v32  ;;  %v861_v18 = vmul.f32 1.442695, %v846_v30  ;;  %v935_v27 = vmul.f32 %v2983_v31, %v927_v24 }
 0x40c   : > { %2228 = vpow2.f32 %v855_v34  ;;  %v930_v34 = vld [vmem:[#allocation4 + $0x18] sm:$0xff] }
 0x40d   : > { %885 = vperm.xlu1 %2217, %v835_v12  }
 0x411   : > { %895 = vperm.xlu1 %2217, %v2967_v21  }
 0x412   : > { %v2987_v35 = vpop.eup %2220 }
 0x413   : > { %1009 = vperm.xlu0 %2216, %v2987_v35  }
 0x415   : > { %900 = vperm.xlu1 %2217, %v2977_v29  }
 0x416   : > { %v2991_v36 = vpop.eup %2222 }
 0x417   : > { %1019 = vperm.xlu0 %2216, %v2991_v36   ;;  %v2994_v37 = vpop.eup %2224 }
 0x418   : > { %v2997_v38 = vpop.eup %2226  ;;  %v936_v30 = vmul.f32 %v2994_v37, %v928_v22 }
 0x419   : > { %999 = vperm.xlu1 %2217, %v2994_v37   ;;  %v3000_v39 = vpop.eup %2228 }
 0x41d   : > { %1004 = vperm.xlu1 %2217, %v2997_v38  }
 0x421   : > { %1014 = vperm.xlu1 %2217, %v3000_v39  }
 0x474   : > { %v866_v40 = vpop.permute.xlu0 %865 }
 0x475   : > { %v903_v41 = vsub.f32 %v2929_v44, %v866_v40 }
 0x477   : > { %v911_v42 = vmul.f32 1.442695, %v903_v41  ;;  %v938_v41 = vmul.f32 %v2987_v35, %v930_v34 }
 0x478   : > { %v871_v45 = vpop.permute.xlu1 %870 }
 0x479   : > { %2230 = vpow2.f32 %v911_v42  ;;  %v904_v48 = vsub.f32 %v2927_v43, %v871_v45  ;;  %v929_v45 = vld [vmem:[#allocation4 + $0x10] sm:$0xff] }
 0x47a   : > { %v937_v31 = vmul.f32 %v2997_v38, %v929_v45 }
 0x47b   : > { %v913_v49 = vmul.f32 1.442695, %v904_v48 }
 0x47c   : > { %v881_v52 = vpop.permute.xlu1 %880 }
 0x47d   : > { %2232 = vpow2.f32 %v913_v49  ;;  %v906_v53 = vsub.f32 %v2933_v46, %v881_v52  ;;  %v932_v52 = vld [vmem:[#allocation4 + $0x28] sm:$0xff] }
 0x47e   : > { %v940_v37 = vmul.f32 %v2991_v36, %v932_v52 }
 0x47f   : > { %v917_v55 = vmul.f32 1.442695, %v906_v53 }
 0x480   : > { %v876_v57 = vpop.permute.xlu1 %875 }
 0x481   : > { %2234 = vpow2.f32 %v917_v55  ;;  %v905_v58 = vsub.f32 %v2935_v47, %v876_v57  ;;  %v931_v57 = vld [vmem:[#allocation4 + $0x20] sm:$0xff] }
 0x482   : > { %v939_v35 = vmul.f32 %v3000_v39, %v931_v57 }
 0x483   : > { %v915_v59 = vmul.f32 1.442695, %v905_v58 }
 0x484   : > { %v891_v60 = vpop.permute.xlu1 %890 }
 0x485   : > { %2236 = vpow2.f32 %v915_v59  ;;  %v908_v44 = vsub.f32 %v2941_v50, %v891_v60  ;;  %v933_v60 = vld [vmem:[#allocation4 + $0x30] sm:$0xff] }
 0x486   : > { %v2231_v61 = vpop.eup %2230  ;;  %v995_v25 = vpop.permute.xlu0 %994 }
 0x487   : > { %v921_v62 = vmul.f32 1.442695, %v908_v44  ;;  %1931 = vmatprep.mubr.msk.f32.mxu1 %vm806_vm1, %v2231_v61  ;;  %v943_v43 = vsel %vm806_vm1, %v2231_v61, 0.0 }
 0x488   : > { %v886_v63 = vpop.permute.xlu1 %885  ;;  %944 = vadd.xlane.f32.xlu1 %v943_v43 }
 0x489   : > { %2238 = vpow2.f32 %v921_v62  ;;  %v907_v46 = vsub.f32 %v2943_v51, %v886_v63  ;;  %v934_v62 = vld [vmem:[#allocation4 + $0x38] sm:$0xff] }
 0x48a   : > { %v2233_v0 = vpop.eup %2232 }
 0x48b   : > { %v919_v1 = vmul.f32 1.442695, %v907_v46  ;;  %1932 = vmatmul.mubr.msk.f32.vlgmr.msra.gmra.mxu1 %vm806_vm1, %v2233_v0  ;;  %v946_v47 = vsel %vm806_vm1, %v2233_v0, 0.0  ;;  %v985_v0 = vld [vmem:[#allocation5 + $0x18] sm:$0xff] }
 0x48c   : > { %947 = vadd.xlane.f32.xlu0 %v946_v47  ;;  %v896_v2 = vpop.permute.xlu1 %895 }
 0x48d   : > { %2240 = vpow2.f32 %v919_v1  ;;  %v909_v50 = vsub.f32 %v2953_v56, %v896_v2  ;;  %v984_v1 = vld [vmem:[#allocation5] sm:$0xff] }
 0x48e   : > { %v2235_v3 = vpop.eup %2234  ;;  %v1010_v14 = vpop.permute.xlu0 %1009  ;;  %v1032_v2 = vmul.f32 %v995_v25, %v984_v1 }
 0x48f   : > { %v923_v4 = vmul.f32 1.442695, %v909_v50  ;;  %v952_v5 = vsel %vm806_vm1, %v2235_v3, 0.0 }
 0x490   : > { %v901_v6 = vpop.permute.xlu1 %900  ;;  %953 = vadd.xlane.f32.xlu1 %v952_v5  ;;  %v987_v5 = vld [vmem:[#allocation5 + $0x20] sm:$0xff] }
 0x491   : > { %2242 = vpow2.f32 %v923_v4  ;;  %v910_v51 = vsub.f32 %v2949_v54, %v901_v6  ;;  %v986_v6 = vld [vmem:[#allocation5 + $0x10] sm:$0xff] }
 0x492   : > { %v2237_v7 = vpop.eup %2236  ;;  %v1020_v28 = vpop.permute.xlu0 %1019 }
 0x493   : > { %v925_v8 = vmul.f32 1.442695, %v910_v51  ;;  %1934 = vmatprep.mubr.msk.f32.mxu1 %vm806_vm1, %v2237_v7  ;;  %v949_v9 = vsel %vm806_vm1, %v2237_v7, 0.0  ;;  %v1035_v51 = vmul.f32 %v1010_v14, %v987_v5 }
 0x494   : > { %950 = vadd.xlane.f32.xlu0 %v949_v9  ;;  %1935 = vmatmul.mubr.msk.f32.gmra.mxu1 %vm806_vm1, %v2235_v3  ;;  %v1000_v23 = vpop.permute.xlu1 %999 }
 0x495   : > { %2244 = vpow2.f32 %v925_v8  ;;  %v1033_v47 = vmul.f32 %v1000_v23, %v985_v0  ;;  %v990_v23 = vld [vmem:[#allocation5 + $0x30] sm:$0xff] }
 0x496   : > { %v2239_v56 = vpop.eup %2238  ;;  %2246 = vpow2.f32 %v859_v16 }
 0x497   : > { %v958_v10 = vsel %vm806_vm1, %v2239_v56, 0.0  ;;  %2248 = vpow2.f32 %v861_v18  ;;  %v991_v18 = vld [vmem:[#allocation5 + $0x38] sm:$0xff] }
 0x498   : > { %959 = vadd.xlane.f32.xlu1 %v958_v10  ;;  %v1005_v26 = vpop.permute.xlu1 %1004 }
 0x499   : > { %v1034_v8 = vmul.f32 %v1005_v26, %v986_v6 }
 0x49a   : > { %v2241_v11 = vpop.eup %2240 }
 0x49b   : > { %1937 = vmatprep.mubr.msk.f32.mxu1 %vm806_vm1, %v2241_v11  ;;  %v955_v12 = vsel %vm806_vm1, %v2241_v11, 0.0  ;;  %v989_v11 = vld [vmem:[#allocation5 + $0x8] sm:$0xff] }
 0x49c   : > { %956 = vadd.xlane.f32.xlu0 %v955_v12  ;;  %1938 = vmatmul.mubr.msk.f32.gmra.mxu1 %vm806_vm1, %v2239_v56  ;;  %v3033_v21 = vpop.permute.xlu1 %1014  ;;  %v988_v12 = vld [vmem:[#allocation5 + $0x28] sm:$0xff] }
 0x49e   : > { %v2243_v54 = vpop.eup %2242 }
 0x49f   : > { %1940 = vmatprep.mubr.msk.f32.mxu1 %vm806_vm1, %v2243_v54  ;;  %v961_v13 = vsel %vm806_vm1, %v2243_v54, 0.0  ;;  %v1037_v54 = vmul.f32 %v1020_v28, %v989_v11 }
 0x4a0   : > { %962 = vadd.xlane.f32.xlu0 %v961_v13 }
 0x4a2   : > { %v2245_v15 = vpop.eup %2244 }
 0x4a3   : > { %1941 = vmatmul.mubr.msk.f32.gmra.mxu1 %vm806_vm1, %v2245_v15  ;;  %v964_v17 = vsel %vm806_vm1, %v2245_v15, 0.0  ;;  %v2247_v19 = vpop.eup %2246  ;;  %v1036_v15 = vmul.f32 %v3033_v21, %v988_v12 }
 0x4a4   : > { %965 = vadd.xlane.f32.xlu1 %v964_v17  ;;  %v2249_v20 = vpop.eup %2248  ;;  %v941_v38 = vmul.f32 %v2247_v19, %v933_v60 }
 0x4a5   : > { %v942_v63 = vmul.f32 %v2249_v20, %v934_v62 }
 0x4b5   : > { %1024 = vperm.xlu1 %2217, %v2247_v19  }
 0x4b6   : > { %1029 = vperm.xlu0 %2216, %v2249_v20  }
 0x511   : > { %v945_v32 = vpop.xlane.xlu1 %944 }
 0x512   : > { %v967_v29 = vadd.f32 %v945_v32, %v935_v27 }
 0x514   : > { %976 = vst.msk [vmem:[#allocation4] sm:$0xff] %vm975_vm2, %v967_v29 }
 0x515   : > { %v948_v33 = vpop.xlane.xlu0 %947 }
 0x516   : > { %v968_v40 = vadd.f32 %v948_v33, %v936_v30 }
 0x518   : > { %977 = vst.msk [vmem:[#allocation4 + $0x8] sm:$0xff] %vm975_vm2, %v968_v40 }
 0x519   : > { %v954_v42 = vpop.xlane.xlu1 %953 }
 0x51a   : > { %v970_v48 = vadd.f32 %v954_v42, %v938_v41 }
 0x51c   : > { %979 = vst.msk [vmem:[#allocation4 + $0x18] sm:$0xff] %vm975_vm2, %v970_v48 }
 0x51d   : > { %v951_v49 = vpop.xlane.xlu0 %950 }
 0x51e   : > { %v969_v53 = vadd.f32 %v951_v49, %v937_v31 }
 0x520   : > { %978 = vst.msk [vmem:[#allocation4 + $0x10] sm:$0xff] %vm975_vm2, %v969_v53 }
 0x521   : > { %v960_v55 = vpop.xlane.xlu1 %959 }
 0x522   : > { %v972_v58 = vadd.f32 %v960_v55, %v940_v37 }
 0x524   : > { %981 = vst.msk [vmem:[#allocation4 + $0x28] sm:$0xff] %vm975_vm2, %v972_v58 }
 0x525   : > { %v957_v59 = vpop.xlane.xlu0 %956 }
 0x526   : > { %v971_v44 = vadd.f32 %v957_v59, %v939_v35 }
 0x528   : > { %980 = vst.msk [vmem:[#allocation4 + $0x20] sm:$0xff] %vm975_vm2, %v971_v44 }
 0x529   : > { %v963_v61 = vpop.xlane.xlu0 %962 }
 0x52a   : > { %v973_v43 = vadd.f32 %v963_v61, %v941_v38 }
 0x52c   : > { %982 = vst.msk [vmem:[#allocation4 + $0x30] sm:$0xff] %vm975_vm2, %v973_v43 }
 0x52d   : > { %v966_v36 = vpop.xlane.xlu1 %965 }
 0x52e   : > { %v974_v46 = vadd.f32 %v966_v36, %v942_v63 }
 0x530   : > { %983 = vst.msk [vmem:[#allocation4 + $0x38] sm:$0xff] %vm975_vm2, %v974_v46 }
 0x531   : > { %v1030_v19 = vpop.permute.xlu0 %1029  ;;  %v1025_v25 = vpop.permute.xlu1 %1024 }
 0x532   : > { %v1039_v26 = vmul.f32 %v1030_v19, %v991_v18  ;;  %v1038_v24 = vmul.f32 %v1025_v25, %v990_v23 }
 0x54b   : > { %v1933_v39 = vpop.f32.mrf.mxu1 }
 0x54c   : > { %v1170_v50 = vadd.f32 %v1933_v39, %v1033_v47 }
 0x54d   : > { %v1130_v3 = vpop.f32.mrf.mxu1 }
 0x54e   : > { %1178 = vst [vmem:[#allocation5 + $0x18] sm:$0xff] %v1170_v50  ;;  %v1169_v4 = vadd.f32 %v1130_v3, %v1032_v2 }
 0x550   : > { %1177 = vst [vmem:[#allocation5] sm:$0xff] %v1169_v4 }
 0x554   : > { %v1936_v7 = vpop.f32.mrf.mxu1 }
 0x555   : > { %v1172_v9 = vadd.f32 %v1936_v7, %v1035_v51 }
 0x556   : > { %v1140_v56 = vpop.f32.mrf.mxu1 }
 0x557   : > { %1180 = vst [vmem:[#allocation5 + $0x20] sm:$0xff] %v1172_v9  ;;  %v1171_v10 = vadd.f32 %v1140_v56, %v1034_v8 }
 0x559   : > { %1179 = vst [vmem:[#allocation5 + $0x10] sm:$0xff] %v1171_v10 }
 0x55c   : > { %v1939_v13 = vpop.f32.mrf.mxu1 }
 0x55d   : > { %v1174_v16 = vadd.f32 %v1939_v13, %v1037_v54 }
 0x55e   : > { %v1150_v17 = vpop.f32.mrf.mxu1 }
 0x55f   : > { %1182 = vst [vmem:[#allocation5 + $0x8] sm:$0xff] %v1174_v16  ;;  %v1173_v20 = vadd.f32 %v1150_v17, %v1036_v15 }
 0x561   : > { %1181 = vst [vmem:[#allocation5 + $0x28] sm:$0xff] %v1173_v20 }
 0x563   : > { %v1942_v14 = vpop.f32.mrf.mxu1 }
 0x564   : > { %v1176_v27 = vadd.f32 %v1942_v14, %v1039_v26  ;;  %1196 = sbr.rel (%p1756_p6) target bundleno = 2066 (0x812), region = 68 }
 0x565   : > { %v1160_v32 = vpop.f32.mrf.mxu1 }
 0x566   : > { %1184 = vst [vmem:[#allocation5 + $0x38] sm:$0xff] %v1176_v27  ;;  %v1175_v22 = vadd.f32 %v1160_v32, %v1038_v24 }
 0x568   : > { %1183 = vst [vmem:[#allocation5 + $0x30] sm:$0xff] %v1175_v22 }
 0x569   : > { %v1206_v21 = vld [vmem:[#allocation4 + $0x8] sm:$0xff]  ;;  %v1205_v28 = vld [vmem:[#allocation4] sm:$0xff]  ;;  %v2597_v30 = vmov 0   ;;  %v1284_v34 = vld [vmem:[#allocation14 + $0x78] sm:$0xff] }
 0x56a   : > { %v1210_v29 = vld [vmem:[#allocation4 + $0x28] sm:$0xff]  ;;  %2251 = vset.pattern.permute.xlu1 %v2597_v30  ;;  %2250 = vset.pattern.permute.xlu0 %v2597_v30  ;;  %2252 = vrcp.f32 %v1206_v21  ;;  %v1209_v33 = vld [vmem:[#allocation4 + $0x20] sm:$0xff]  ;;  %v1283_v40 = vld [vmem:[#allocation14 + $0x70] sm:$0xff] }
 0x56b   : > { %2254 = vrcp.f32 %v1205_v28  ;;  %1943 = vmatprep.subr.mxu0 %v1284_v34  ;;  %2019 = vmatprep.subr.mxu1 %v1284_v34  ;;  %v1211_v41 = vld [vmem:[#allocation4 + $0x30] sm:$0xff]  ;;  %v1282_v42 = vld [vmem:[#allocation14 + $0x68] sm:$0xff]  ;;  %v1281_v48 = vld [vmem:[#allocation14 + $0x60] sm:$0xff] }
 0x56c   : > { %2256 = vrcp.f32 %v1210_v29  ;;  %1944 = vmatpush3.msra.mxu0 %v1284_v34  ;;  %2035 = vmatpush3.msra.mxu1 %v1284_v34  ;;  %v1207_v45 = vld [vmem:[#allocation4 + $0x10] sm:$0xff]  ;;  %v1212_v31 = vld [vmem:[#allocation4 + $0x38] sm:$0xff]  ;;  %v1278_v37 = vld [vmem:[#allocation14 + $0x48] sm:$0xff] }
 0x56d   : > { %2258 = vrcp.f32 %v1209_v33  ;;  %1945 = vmatprep.subr.mxu0 %v1283_v40  ;;  %2020 = vmatprep.subr.mxu1 %v1283_v40  ;;  %v1280_v49 = vld [vmem:[#allocation14 + $0x58] sm:$0xff]  ;;  %v1279_v53 = vld [vmem:[#allocation14 + $0x50] sm:$0xff]  ;;  %v1277_v57 = vld [vmem:[#allocation14 + $0x40] sm:$0xff] }
 0x56e   : > { %1946 = vmatpush3.msra.mxu0 %v1283_v40  ;;  %2036 = vmatpush3.msra.mxu1 %v1283_v40  ;;  %2260 = vrcp.f32 %v1211_v41  ;;  %v1208_v52 = vld [vmem:[#allocation4 + $0x18] sm:$0xff]  ;;  %v1275_v44 = vld [vmem:[#allocation14 + $0x30] sm:$0xff]  ;;  %v1274_v62 = vld [vmem:[#allocation14 + $0x28] sm:$0xff] }
 0x56f   : > { %1947 = vmatprep.subr.mxu0 %v1282_v42  ;;  %2021 = vmatprep.subr.mxu1 %v1282_v42  ;;  %2262 = vrcp.f32 %v1207_v45  ;;  %v1276_v59 = vld [vmem:[#allocation14 + $0x38] sm:$0xff]  ;;  %v1273_v43 = vld [vmem:[#allocation14 + $0x20] sm:$0xff]  ;;  %v1271_v0 = vld [vmem:[#allocation14 + $0x10] sm:$0xff] }
 0x570   : > { %1948 = vmatpush3.msra.mxu0 %v1282_v42  ;;  %2037 = vmatpush3.msra.mxu1 %v1282_v42  ;;  %2264 = vrcp.f32 %v1212_v31  ;;  %v1272_v46 = vld [vmem:[#allocation14 + $0x18] sm:$0xff]  ;;  %v1270_v1 = vld [vmem:[#allocation14 + $0x8] sm:$0xff]  ;;  %v1269_v47 = vld [vmem:[#allocation14] sm:$0xff] }
 0x571   : > { %1949 = vmatprep.subr.mxu0 %v1281_v48  ;;  %2022 = vmatprep.subr.mxu1 %v1281_v48  ;;  %2266 = vrcp.f32 %v1208_v52  ;;  %v1198_v39 = vld [vmem:[#allocation5 + $0x18] sm:$0xff]  ;;  %v1197_v2 = vld [vmem:[#allocation5] sm:$0xff]  ;;  %v1202_v6 = vld [vmem:[#allocation5 + $0x8] sm:$0xff] }
 0x572   : > { %1950 = vmatpush3.msra.mxu0 %v1281_v48  ;;  %2038 = vmatpush3.msra.mxu1 %v1281_v48  ;;  %v1201_v51 = vld [vmem:[#allocation5 + $0x28] sm:$0xff]  ;;  %v1203_v10 = vld [vmem:[#allocation5 + $0x30] sm:$0xff]  ;;  %v1204_v16 = vld [vmem:[#allocation5 + $0x38] sm:$0xff] }
 0x573   : > { %1951 = vmatprep.subr.mxu0 %v1280_v49  ;;  %2023 = vmatprep.subr.mxu1 %v1280_v49  ;;  %v1199_v11 = vld [vmem:[#allocation5 + $0x10] sm:$0xff]  ;;  %v1200_v17 = vld [vmem:[#allocation5 + $0x20] sm:$0xff] }
 0x574   : > { %1952 = vmatpush3.msra.mxu0 %v1280_v49  ;;  %2039 = vmatpush3.msra.mxu1 %v1280_v49 }
 0x575   : > { %1953 = vmatprep.subr.mxu0 %v1279_v53  ;;  %2024 = vmatprep.subr.mxu1 %v1279_v53 }
 0x576   : > { %1954 = vmatpush3.msra.mxu0 %v1279_v53  ;;  %2040 = vmatpush3.msra.mxu1 %v1279_v53 }
 0x577   : > { %v2253_v55 = vpop.eup %2252  ;;  %1955 = vmatprep.subr.mxu0 %v1278_v37  ;;  %2025 = vmatprep.subr.mxu1 %v1278_v37 }
 0x578   : > { %v2255_v58 = vpop.eup %2254  ;;  %1228 = vperm.xlu1 %2251, %v2253_v55   ;;  %1956 = vmatpush3.msra.mxu0 %v1278_v37 }
 0x579   : > { %v2257_v35 = vpop.eup %2256  ;;  %1223 = vperm.xlu0 %2250, %v2255_v58   ;;  %1957 = vmatprep.subr.mxu0 %v1277_v57 }
 0x57a   : > { %v2259_v60 = vpop.eup %2258  ;;  %1958 = vmatpush3.msra.mxu0 %v1277_v57  ;;  %2041 = vmatpush3.msra.mxu1 %v1278_v37 }
 0x57b   : > { %1959 = vmatprep.subr.mxu0 %v1276_v59  ;;  %v2261_v38 = vpop.eup %2260  ;;  %2026 = vmatprep.subr.mxu1 %v1277_v57 }
 0x57c   : > { %1248 = vperm.xlu1 %2251, %v2257_v35   ;;  %1960 = vmatpush3.msra.mxu0 %v1276_v59  ;;  %v2263_v61 = vpop.eup %2262 }
 0x57d   : > { %1243 = vperm.xlu0 %2250, %v2259_v60   ;;  %1961 = vmatprep.subr.mxu0 %v1275_v44  ;;  %v2265_v63 = vpop.eup %2264 }
 0x57e   : > { %2042 = vmatpush3.msra.mxu1 %v1277_v57  ;;  %1962 = vmatpush3.msra.mxu0 %v1275_v44  ;;  %v2267_v36 = vpop.eup %2266 }
 0x57f   : > { %2027 = vmatprep.subr.mxu1 %v1276_v59  ;;  %1963 = vmatprep.subr.mxu0 %v1274_v62 }
 0x580   : > { %1253 = vperm.xlu1 %2251, %v2261_v38   ;;  %2043 = vmatpush3.msra.mxu1 %v1276_v59 }
 0x581   : > { %1233 = vperm.xlu0 %2250, %v2263_v61   ;;  %1964 = vmatpush3.msra.mxu0 %v1274_v62 }
 0x582   : > { %2028 = vmatprep.subr.mxu1 %v1275_v44  ;;  %1965 = vmatprep.subr.mxu0 %v1273_v43 }
 0x583   : > { %2044 = vmatpush3.msra.mxu1 %v1275_v44  ;;  %1966 = vmatpush3.msra.mxu0 %v1273_v43 }
 0x584   : > { %1258 = vperm.xlu1 %2251, %v2265_v63   ;;  %2029 = vmatprep.subr.mxu1 %v1274_v62 }
 0x585   : > { %1238 = vperm.xlu0 %2250, %v2267_v36   ;;  %1967 = vmatprep.subr.mxu0 %v1272_v46 }
 0x586   : > { %2045 = vmatpush3.msra.mxu1 %v1274_v62  ;;  %1968 = vmatpush3.msra.mxu0 %v1272_v46 }
 0x587   : > { %2030 = vmatprep.subr.mxu1 %v1273_v43  ;;  %1969 = vmatprep.subr.mxu0 %v1271_v0 }
 0x588   : > { %2046 = vmatpush3.msra.mxu1 %v1273_v43  ;;  %1970 = vmatpush3.msra.mxu0 %v1271_v0 }
 0x589   : > { %2031 = vmatprep.subr.mxu1 %v1272_v46  ;;  %1971 = vmatprep.subr.mxu0 %v1270_v1 }
 0x58a   : > { %2047 = vmatpush3.msra.mxu1 %v1272_v46  ;;  %1972 = vmatpush3.msra.mxu0 %v1270_v1 }
 0x58b   : > { %2032 = vmatprep.subr.mxu1 %v1271_v0  ;;  %1973 = vmatprep.subr.mxu0 %v1269_v47 }
 0x58c   : > { %2048 = vmatpush3.msra.mxu1 %v1271_v0  ;;  %1974 = vmatpush3.msra.mxu0 %v1269_v47 }
 0x58d   : > { %2033 = vmatprep.subr.mxu1 %v1270_v1 }
 0x58e   : > { %2049 = vmatpush3.msra.mxu1 %v1270_v1 }
 0x58f   : > { %2034 = vmatprep.subr.mxu1 %v1269_v47 }
 0x590   : > { %2050 = vmatpush3.msra.mxu1 %v1269_v47 }
 0x5f3   : > { %v1229_v50 = vpop.permute.xlu1 %1228 }
 0x5f4   : > { %v1262_v3 = vmul.f32 %v1229_v50, %v1198_v39  ;;  %v1224_v4 = vpop.permute.xlu0 %1223 }
 0x5f5   : > { %v1261_v5 = vmul.f32 %v1224_v4, %v1197_v2 }
 0x5f7   : > { %1975 = vmatprep.mubr.f32.mxu0 %v1261_v5  ;;  %v1249_v7 = vpop.permute.xlu1 %1248 }
 0x5f8   : > { %v1266_v8 = vmul.f32 %v1249_v7, %v1202_v6  ;;  %v1244_v9 = vpop.permute.xlu0 %1243  ;;  %1976 = vmatmul.mubr.f32.vlgmr.msra.gmra.mxu0 %v1262_v3 }
 0x5f9   : > { %v1265_v56 = vmul.f32 %v1244_v9, %v1201_v51 }
 0x5fb   : > { %1981 = vmatprep.mubr.f32.mxu1 %v1265_v56  ;;  %v1254_v12 = vpop.permute.xlu1 %1253 }
 0x5fc   : > { %v1267_v54 = vmul.f32 %v1254_v12, %v1203_v10  ;;  %v1234_v13 = vpop.permute.xlu0 %1233  ;;  %1982 = vmatmul.mubr.f32.vlgmr.msra.gmra.mxu1 %v1266_v8 }
 0x5fd   : > { %v1263_v15 = vmul.f32 %v1234_v13, %v1199_v11 }
 0x5fe   : > { %1984 = vmatprep.mubr.f32.mxu1 %v1267_v54 }
 0x5ff   : > { %1978 = vmatprep.mubr.f32.mxu0 %v1263_v15  ;;  %v1259_v18 = vpop.permute.xlu1 %1258 }
 0x600   : > { %v1268_v19 = vmul.f32 %v1259_v18, %v1204_v16  ;;  %v1239_v20 = vpop.permute.xlu0 %1238 }
 0x601   : > { %v1264_v23 = vmul.f32 %v1239_v20, %v1200_v17 }
 0x602   : > { %1985 = vmatmul.mubr.f32.gmra.mxu1 %v1268_v19 }
 0x603   : > { %1979 = vmatmul.mubr.f32.gmra.mxu0 %v1264_v23 }
 0x6b8   : > { %v1977_v25 = vpop.f32.mrf.mxu0 }
 0x6b9   : > { %1392 = vadd.xlane.f32.xlu1 %v1977_v25 }
 0x6ba   : > { %v1351_v24 = vpop.f32.mrf.mxu0 }
 0x6bc   : > { %v1983_v26 = vpop.f32.mrf.mxu1 }
 0x6bd   : > { %1400 = vadd.xlane.f32.xlu0 %v1983_v26 }
 0x6be   : > { %v1371_v14 = vpop.f32.mrf.mxu1 }
 0x6bf   : > { %1398 = vadd.xlane.f32.xlu1 %v1371_v14 }
 0x6c1   : > { %1390 = vadd.xlane.f32.xlu0 %v1351_v24 }
 0x6c2   : > { %v1986_v27 = vpop.f32.mrf.mxu1 }
 0x6c3   : > { %v1980_v32 = vpop.f32.mrf.mxu0 }
 0x6c4   : > { %v1381_v22 = vpop.f32.mrf.mxu1 }
 0x6c5   : > { %1396 = vadd.xlane.f32.xlu0 %v1980_v32  ;;  %1402 = vadd.xlane.f32.xlu1 %v1381_v22  ;;  %v1361_v21 = vpop.f32.mrf.mxu0 }
 0x6c9   : > { %1394 = vadd.xlane.f32.xlu0 %v1361_v21 }
 0x6cd   : > { %1404 = vadd.xlane.f32.xlu0 %v1986_v27 }
 0x742   : > { %v1393_v28 = vpop.xlane.xlu1 %1392 }
 0x743   : > { %v1408_v29 = vmul.f32 0.0078125, %v1393_v28 }
 0x745   : > { %v3051_v30 = vsub.f32 %v1977_v25, %v1408_v29 }
 0x746   : > { %v1401_v33 = vpop.xlane.xlu0 %1400 }
 0x747   : > { %v1412_v34 = vmul.f32 0.0078125, %v1401_v33  ;;  %v1424_v40 = vmul.f32 %v3051_v30, %v3051_v30 }
 0x748   : > { %v1399_v41 = vpop.xlane.xlu1 %1398 }
 0x749   : > { %v3055_v42 = vsub.f32 %v1983_v26, %v1412_v34  ;;  %1433 = vadd.xlane.f32.xlu0 %v1424_v40  ;;  %v1411_v48 = vmul.f32 0.0078125, %v1399_v41 }
 0x74a   : > { %v1391_v45 = vpop.xlane.xlu0 %1390 }
 0x74b   : > { %v1407_v31 = vmul.f32 0.0078125, %v1391_v45  ;;  %v1428_v49 = vmul.f32 %v3055_v42, %v3055_v42  ;;  %v3061_v37 = vsub.f32 %v1371_v14, %v1411_v48 }
 0x74d   : > { %v3059_v52 = vsub.f32 %v1351_v24, %v1407_v31  ;;  %1441 = vadd.xlane.f32.xlu0 %v1428_v49  ;;  %v1427_v38 = vmul.f32 %v3061_v37, %v3061_v37 }
 0x74e   : > { %v1397_v53 = vpop.xlane.xlu0 %1396  ;;  %v1403_v58 = vpop.xlane.xlu1 %1402 }
 0x74f   : > { %v1410_v55 = vmul.f32 0.0078125, %v1397_v53  ;;  %v1423_v57 = vmul.f32 %v3059_v52, %v3059_v52  ;;  %v1413_v60 = vmul.f32 0.0078125, %v1403_v58 }
 0x751   : > { %v3065_v35 = vsub.f32 %v1980_v32, %v1410_v55  ;;  %1431 = vadd.xlane.f32.xlu1 %v1423_v57  ;;  %v3073_v63 = vsub.f32 %v1381_v22, %v1413_v60 }
 0x752   : > { %v1395_v59 = vpop.xlane.xlu0 %1394 }
 0x753   : > { %v1409_v44 = vmul.f32 0.0078125, %v1395_v59  ;;  %v1426_v61 = vmul.f32 %v3065_v35, %v3065_v35  ;;  %v1429_v1 = vmul.f32 %v3073_v63, %v3073_v63 }
 0x755   : > { %v3071_v62 = vsub.f32 %v1361_v21, %v1409_v44  ;;  %1439 = vadd.xlane.f32.xlu1 %v1427_v38  ;;  %1437 = vadd.xlane.f32.xlu0 %v1426_v61 }
 0x756   : > { %v1405_v43 = vpop.xlane.xlu0 %1404 }
 0x757   : > { %v1414_v36 = vmul.f32 0.0078125, %v1405_v43  ;;  %v1425_v46 = vmul.f32 %v3071_v62, %v3071_v62  ;;  %v1536_v43 = vld [vmem:[%s2862_s26 + $0x8] sm:$0xff] }
 0x759   : > { %v3077_v0 = vsub.f32 %v1986_v27, %v1414_v36  ;;  %1435 = vadd.xlane.f32.xlu1 %v1425_v46 }
 0x75b   : > { %v1430_v47 = vmul.f32 %v3077_v0, %v3077_v0 }
 0x75d   : > { %1443 = vadd.xlane.f32.xlu1 %v1429_v1  ;;  %1445 = vadd.xlane.f32.xlu0 %v1430_v47 }
 0x7d2   : > { %v1434_v39 = vpop.xlane.xlu0 %1433 }
 0x7d3   : > { %v1448_v2 = vmul.f32 0.007874016, %v1434_v39 }
 0x7d5   : > { %2268 = vrsqrt.f32 %v1448_v2  ;;  %vm1464_vm3 = vcmp.eq.f32.partialorder %v1448_v2, inf  ;;  %v1467_v12 = vand.u32 2147483648, %v1448_v2  ;;  %vm1466_vm4 = vcmp.eq.f32.partialorder %v1448_v2, 0.0 }
 0x7d6   : > { %v1442_v50 = vpop.xlane.xlu0 %1441 }
 0x7d7   : > { %v1452_v3 = vmul.f32 0.007874016, %v1442_v50 }
 0x7d9   : > { %2270 = vrsqrt.f32 %v1452_v3  ;;  %vm1492_vm5 = vcmp.eq.f32.partialorder %v1452_v3, inf  ;;  %v1495_v25 = vand.u32 2147483648, %v1452_v3  ;;  %vm1494_vm6 = vcmp.eq.f32.partialorder %v1452_v3, 0.0 }
 0x7da   : > { %v1432_v4 = vpop.xlane.xlu1 %1431 }
 0x7db   : > { %v1447_v5 = vmul.f32 0.007874016, %v1432_v4 }
 0x7dd   : > { %2272 = vrsqrt.f32 %v1447_v5  ;;  %vm1457_vm7 = vcmp.eq.f32.partialorder %v1447_v5, inf  ;;  %v1460_v22 = vand.u32 2147483648, %v1447_v5  ;;  %vm1459_vm8 = vcmp.eq.f32.partialorder %v1447_v5, 0.0 }
 0x7de   : > { %v1440_v6 = vpop.xlane.xlu1 %1439  ;;  %v1438_v51 = vpop.xlane.xlu0 %1437 }
 0x7df   : > { %v1451_v7 = vmul.f32 0.007874016, %v1440_v6  ;;  %v1450_v8 = vmul.f32 0.007874016, %v1438_v51  ;;  %v1540_v6 = vld [vmem:[%s2862_s26 + $0x28] sm:$0xff] }
 0x7e1   : > { %2274 = vrsqrt.f32 %v1451_v7  ;;  %vm1485_vm9 = vcmp.eq.f32.partialorder %v1451_v7, inf  ;;  %vm1487_vm10 = vcmp.eq.f32.partialorder %v1451_v7, 0.0  ;;  %v1488_v41 = vand.u32 2147483648, %v1451_v7 }
 0x7e2   : > { %v2269_v9 = vpop.eup %2268  ;;  %2276 = vrsqrt.f32 %v1450_v8  ;;  %v1436_v56 = vpop.xlane.xlu1 %1435  ;;  %vm1478_vm11 = vcmp.eq.f32.partialorder %v1450_v8, inf  ;;  %v1481_v31 = vand.u32 2147483648, %v1450_v8  ;;  %vm1480_vm12 = vcmp.eq.f32.partialorder %v1450_v8, 0.0 }
 0x7e3   : > { %v1463_v10 = vmul.f32 %v2269_v9, %v1448_v2  ;;  %v1449_v11 = vmul.f32 0.007874016, %v1436_v56 }
 0x7e5   : > { %v1465_v54 = vsel %vm1464_vm3, %v1448_v2, %v1463_v10  ;;  %2278 = vrsqrt.f32 %v1449_v11  ;;  %vm1471_vm13 = vcmp.eq.f32.partialorder %v1449_v11, inf  ;;  %v1474_v44 = vand.u32 2147483648, %v1449_v11 }
 0x7e6   : > { %v2271_v13 = vpop.eup %2270  ;;  %v1468_v15 = vsel %vm1466_vm4, %v1467_v12, %v1465_v54  ;;  %v1444_v16 = vpop.xlane.xlu1 %1443  ;;  %vm1473_vm14 = vcmp.eq.f32.partialorder %v1449_v11, 0.0 }
 0x7e7   : > { %v1446_v17 = vpop.xlane.xlu0 %1445  ;;  %v1512_v18 = vadd.f32 1e-06, %v1468_v15  ;;  %v1491_v19 = vmul.f32 %v2271_v13, %v1452_v3  ;;  %v3083_v20 = vmul.f32 0.007874016, %v1444_v16  ;;  %v1535_v13 = vld [vmem:[%s2862_s26] sm:$0xff] }
 0x7e8   : > { %v3085_v23 = vmul.f32 0.007874016, %v1446_v17  ;;  %v1539_v17 = vld [vmem:[%s2862_s26 + $0x20] sm:$0xff] }
 0x7e9   : > { %2280 = vrcp.f32 %v1512_v18  ;;  %v1493_v26 = vsel %vm1492_vm5, %v1452_v3, %v1491_v19  ;;  %vm1499_vm15 = vcmp.eq.f32.partialorder %v3083_v20, inf  ;;  %v1502_v3 = vand.u32 2147483648, %v3083_v20 }
 0x7ea   : > { %v2273_v14 = vpop.eup %2272  ;;  %v1496_v24 = vsel %vm1494_vm6, %v1495_v25, %v1493_v26  ;;  %2282 = vrsqrt.f32 %v3083_v20  ;;  %vm1501_vm0 = vcmp.eq.f32.partialorder %v3083_v20, 0.0  ;;  %vm1506_vm1 = vcmp.eq.f32.partialorder %v3085_v23, inf }
 0x7eb   : > { %v1516_v27 = vadd.f32 1e-06, %v1496_v24  ;;  %v1456_v32 = vmul.f32 %v2273_v14, %v1447_v5  ;;  %2284 = vrsqrt.f32 %v3085_v23  ;;  %vm1508_vm2 = vcmp.eq.f32.partialorder %v3085_v23, 0.0 }
 0x7ed   : > { %2286 = vrcp.f32 %v1516_v27  ;;  %v1458_v21 = vsel %vm1457_vm7, %v1447_v5, %v1456_v32 }
 0x7ee   : > { %v2275_v28 = vpop.eup %2274  ;;  %v1461_v29 = vsel %vm1459_vm8, %v1460_v22, %v1458_v21  ;;  %v1541_v22 = vld [vmem:[%s2862_s26 + $0x30] sm:$0xff] }
 0x7ef   : > { %v2277_v33 = vpop.eup %2276  ;;  %v1511_v34 = vadd.f32 1e-06, %v1461_v29  ;;  %v1484_v40 = vmul.f32 %v2275_v28, %v1451_v7  ;;  %v1542_v28 = vld [vmem:[%s2862_s26 + $0x38] sm:$0xff] }
 0x7f0   : > { %v1477_v45 = vmul.f32 %v2277_v33, %v1450_v8 }
 0x7f1   : > { %2288 = vrcp.f32 %v1511_v34  ;;  %v1486_v48 = vsel %vm1485_vm9, %v1451_v7, %v1484_v40 }
 0x7f2   : > { %v2279_v49 = vpop.eup %2278  ;;  %v1489_v53 = vsel %vm1487_vm10, %v1488_v41, %v1486_v48  ;;  %v1479_v55 = vsel %vm1478_vm11, %v1450_v8, %v1477_v45 }
 0x7f3   : > { %v1515_v57 = vadd.f32 1e-06, %v1489_v53  ;;  %v1482_v58 = vsel %vm1480_vm12, %v1481_v31, %v1479_v55  ;;  %v1470_v59 = vmul.f32 %v2279_v49, %v1449_v11 }
 0x7f4   : > { %v1514_v60 = vadd.f32 1e-06, %v1482_v58 }
 0x7f5   : > { %2290 = vrcp.f32 %v1515_v57  ;;  %v1472_v38 = vsel %vm1471_vm13, %v1449_v11, %v1470_v59 }
 0x7f6   : > { %v2281_v61 = vpop.eup %2280  ;;  %2292 = vrcp.f32 %v1514_v60  ;;  %v1475_v36 = vsel %vm1473_vm14, %v1474_v44, %v1472_v38 }
 0x7f7   : > { %v2283_v46 = vpop.eup %2282  ;;  %v1528_v1 = vmul.f32 %v2281_v61, %v3051_v30  ;;  %v1513_v47 = vadd.f32 1e-06, %v1475_v36  ;;  %v1509_v30 = vand.u32 2147483648, %v3085_v23 }
 0x7f8   : > { %v2285_v39 = vpop.eup %2284  ;;  %v1498_v2 = vmul.f32 %v2283_v46, %v3083_v20 }
 0x7f9   : > { %v1544_v50 = vadd.f32 %v1536_v43, %v1528_v1  ;;  %2294 = vrcp.f32 %v1513_v47  ;;  %v1505_v4 = vmul.f32 %v2285_v39, %v3085_v23 }
 0x7fa   : > { %v2287_v5 = vpop.eup %2286  ;;  %v1500_v51 = vsel %vm1499_vm15, %v3083_v20, %v1498_v2  ;;  %v1538_v20 = vld [vmem:[%s2862_s26 + $0x18] sm:$0xff] }
 0x7fb   : > { %1552 = vst [vmem:[%s2884_s8 + $0x8] sm:$0xff] %v1544_v50  ;;  %v1532_v7 = vmul.f32 %v2287_v5, %v3055_v42  ;;  %v1503_v8 = vsel %vm1501_vm0, %v1502_v3, %v1500_v51  ;;  %v1507_v9 = vsel %vm1506_vm1, %v3085_v23, %v1505_v4 }
 0x7fc   : > { %v1517_v56 = vadd.f32 1e-06, %v1503_v8  ;;  %v1510_v10 = vsel %vm1508_vm2, %v1509_v30, %v1507_v9 }
 0x7fd   : > { %v1548_v11 = vadd.f32 %v1540_v6, %v1532_v7  ;;  %v1518_v12 = vadd.f32 1e-06, %v1510_v10 }
 0x7fe   : > { %v2289_v54 = vpop.eup %2288  ;;  %2296 = vrcp.f32 %v1517_v56 }
 0x7ff   : > { %1556 = vst [vmem:[%s2884_s8 + $0x28] sm:$0xff] %v1548_v11  ;;  %v1527_v42 = vmul.f32 %v2289_v54, %v3059_v52  ;;  %2298 = vrcp.f32 %v1518_v12  ;;  %v1537_v52 = vld [vmem:[%s2862_s26 + $0x10] sm:$0xff] }
 0x801   : > { %v1543_v15 = vadd.f32 %v1535_v13, %v1527_v42 }
 0x802   : > { %v2291_v16 = vpop.eup %2290 }
 0x803   : > { %v2293_v18 = vpop.eup %2292  ;;  %1551 = vst [vmem:[%s2884_s8] sm:$0xff] %v1543_v15  ;;  %v1531_v19 = vmul.f32 %v2291_v16, %v3061_v37 }
 0x804   : > { %v1530_v23 = vmul.f32 %v2293_v18, %v3065_v35 }
 0x805   : > { %v1547_v25 = vadd.f32 %v1539_v17, %v1531_v19 }
 0x806   : > { %v2295_v26 = vpop.eup %2294  ;;  %v1546_v14 = vadd.f32 %v1538_v20, %v1530_v23 }
 0x807   : > { %1555 = vst [vmem:[%s2884_s8 + $0x20] sm:$0xff] %v1547_v25  ;;  %v1529_v24 = vmul.f32 %v2295_v26, %v3071_v62 }
 0x808   : > { %1554 = vst [vmem:[%s2884_s8 + $0x18] sm:$0xff] %v1546_v14 }
 0x809   : > { %v1545_v27 = vadd.f32 %v1537_v52, %v1529_v24 }
 0x80b   : > { %v2297_v32 = vpop.eup %2296  ;;  %1553 = vst [vmem:[%s2884_s8 + $0x10] sm:$0xff] %v1545_v27 }
 0x80c   : > { %v2299_v21 = vpop.eup %2298  ;;  %v1533_v37 = vmul.f32 %v2297_v32, %v3073_v63 }
 0x80d   : > { %v1534_v35 = vmul.f32 %v2299_v21, %v3077_v0 }
 0x80e   : > { %v1549_v29 = vadd.f32 %v1541_v22, %v1533_v37 }
 0x80f   : > { %v1550_v33 = vadd.f32 %v1542_v28, %v1534_v35 }
 0x810   : > { %1557 = vst [vmem:[%s2884_s8 + $0x30] sm:$0xff] %v1549_v29 }
 0x811   : > { %1558 = vst [vmem:[%s2884_s8 + $0x38] sm:$0xff] %v1550_v33 }
 0x812 PF: > { %s3273_s7 = sld [smem:[#allocation23_spill]]  ;;  %s1575_s15 = sshll.u32 %s2884_s8, 4  ;;  %s3126_s15 = int_to_ptr.vmem [resolvable:$true] %s1575_s15 }
 0x813   : > { %s3274_s18 = sld [smem:[#allocation24_spill]]  ;;  %s1560_s16 = scalar_lea.sflag [#allocation8], %s2858_s5 }
 0x814   : > { %s3276_s2 = sld [smem:[#allocation35_spill]]  ;;  %s2434_s24 = scalar_lea.vmem %s3126_s15, 1024 }
 0x815   : > { %p2435_p3 = scmp.ne.s32.totalorder %s3126_s15, %s2434_s24  ;;  %s2598_s4 = smov [#allocation15]  }
 0x816   : > { %s2438_s8 = sshll.u32 %s2598_s4, 4  ;;  %s2439_s8 = int_to_ptr.vmem [resolvable:$false] %s2438_s8 }
 0x817   : > { %p2436_p13 = pnand %p2435_p3, %p2785_p5  ;;  %s2440_s12 = scalar_lea.vmem %s2439_s8, 2048 }
 0x818   : > { %s1758_s17 = sshll.u32 %s3273_s7, 3  ;;  %p2441_p2 = scmp.lt.s32.totalorder %s3126_s15, %s2439_s8 }
 0x819   : > { %s1759_s21 = sshll.u32 %s3274_s18, 4  ;;  %p2437_p12 = pneg %p2436_p13 }
 0x81a   : > { %s1572_s10 = sadd.s32 %s1759_s21, %s1758_s17  ;;  %p2442_p1 = scmp.lt.s32.totalorder %s2440_s12, %s2434_s24 }
 0x81b   : > { %s1760_s26 = sshll.u32 %s1572_s10, 7 }
 0x81c   : > { %s3131_s3 = scalar_lea.hbm %s3276_s2, %s1760_s26  ;;  %p2443_p9 = por %p2442_p1, %p2441_p2 }
 0x81e   : > { %p2444_p0 = pnand %p2443_p9, %p2437_p12 }
 0x820   : > { %2447 = shalt.err (!%p2444_p0)
}
 0x821   : > { %s2448_s7 = scalar_lea.hbm %s3131_s3, 1024  ;;  %s2452_s21 = scalar_lea.hbm %s3276_s2, 4096 }
 0x822   : > { %p2449_p8 = scmp.ne.s32.totalorder %s3131_s3, %s2448_s7  ;;  %p2453_p7 = scmp.lt.s32.totalorder %s3131_s3, %s3276_s2 }
 0x823   : > { %p2454_p11 = scmp.lt.s32.totalorder %s2452_s21, %s2448_s7 }
 0x824   : > { %p2450_p10 = pnand %p2449_p8, %p2785_p5 }
 0x825   : > { %p2455_p6 = por %p2454_p11, %p2453_p7 }
 0x826   : > { %p2451_p4 = pneg %p2450_p10 }
 0x828   : > { %p2456_p3 = pnand %p2455_p6, %p2451_p4 }
 0x82a   : > { %2459 = shalt.err (!%p2456_p3)
}
 0x82b   : > { %s2599_s6 = smov 128   ;;  %s2600_s11 = smov 8  }
 0x82c   : > { %2067 = dma.vmem_to_hbm [thread:$0]  (%p2785_p5), %s3126_s15, 1024, %s3131_s3, %s1560_s16, %s2599_s6, %s2599_s6, %s2600_s11  }
 0x82d PF: > { %s3277_s24 = sld [smem:[#allocation21_spill]]  ;;  %p2097_p13 = scmp.ge.s32.totalorder %s2582_s30, 2 }
 0x82e   : > { %s3278_s4 = sld [smem:[#allocation28_spill]] }
 0x833   : > { %s1590_s8 = sand.u32 1, %s3277_s24  }
 0x834   : > { %p3279_p12 = scmp.ne.s32.totalorder %s3278_s4, 0  ;;  %s1591_s12 = scalar_lea.sflag [#allocation8], %s1590_s8 }
 0x836   : > { %p2087_p2 = pnand %p2097_p13, %p3279_p12 }
 0x838   : > { %p2088_p1 = pneg %p2087_p2 }
 0x83a   : > { %2529 = dma.done.wait (%p2088_p1), %s1591_s12, 1024  }
 0x83b   : > { %2531 = vsyncadd (%p2088_p1), %s1591_s12, 4294966272  ;;  %s25_s30 = sadd.s32 1, %s2582_s30   ;;  %s3281_s5 = sld [smem:[#allocation29_spill]] }
 0x83c   : > { %p3161_p9 = scmp.ge.s32.totalorder %s25_s30, 10   ;;  %s3282_s9 = sld [smem:[#allocation31_spill]] }
 0x83d   : > { %s3283_s18 = smov %s2538_s19  ;;  %s3284_s19 = smov %s2542_s20 }
 0x83e   : > { %s3285_s20 = smov %s2831_s13  ;;  %s3286_s21 = smov %s2550_s22 }
 0x83f   : > { %s3287_s22 = smov %s2554_s23  ;;  %s3288_s23 = smov %s2806_s25 }
 0x840   : > { %s3289_s24 = smov %s2570_s27  ;;  %s3290_s25 = smov %s2574_s28 }
 0x841   : > { %s3291_s26 = smov %s2578_s29  ;;  %s3292_s27 = smov %s3281_s5 }
 0x842   : > { %s3293_s28 = smov %s3282_s9  ;;  %s3294_s29 = smov %s3304_s14 }
 0x843   :  { %24 = sbr.rel (!%p3161_p9) target bundleno = 18 (0x12), region = 118 }
 0x848   :  { %1596 = vsyncpa [#allocation7], 1 }
 0x849   :  { %1598 = vsyncpa [#allocation7 + $0x1], 1 }
 0x84a   :  { %1599 = vsyncpa [#allocation10], 1 }
 0x84b   :  { %1601 = vsyncpa [#allocation10 + $0x1], 1 }
 0x84c   :  { %1602 = vsyncpa [#allocation13], 1 }
 0x84d   :  { %1603 = vsyncpa [#allocation8], 1 }
 0x84e   :  { %1605 = vsyncpa [#allocation8 + $0x1], 1 }

</bundles_post_ra>
